<compile_context>
chip_gen: v6e
topology: v6e:2x2x1
jax: 0.10.0
libtpu: 0.0.40
codegen_flags: <defaults>
</compile_context>

<pallas_src>
import math
import jax
import jax.numpy as jnp
import numpy as np
from jax.experimental import pallas as pl
from jax.experimental.pallas import tpu as pltpu

# ---- problem sizes (small, consistent with the module's forward) ----
BATCH = 2
SEQ = 8
D_MODEL = 32
N_HEAD = 4
HEAD_DIM = D_MODEL // N_HEAD
HIDDEN = 64
TIME_WINDOW = 16          # max_len of the positional encoding (>= SEQ)
LN_EPS = 1e-5

# ---- weight slab (bf16) row offsets; every matrix starts at lane 0 ----
_W_WQ = 0                               # (32,32)  q proj, 1/sqrt(HD) pre-folded
_W_WK = _W_WQ + D_MODEL                 # (32,32)  k proj
_W_WVO = _W_WK + D_MODEL                # H x (32,32) stacked rows: Wv_h @ Wo_h
_W_W1 = _W_WVO + N_HEAD * D_MODEL       # (32,128) fused GLU1 [fc1|fc2]
_W_W2 = _W_W1 + D_MODEL                 # (64,64)  fused GLU2 [fc1|fc2]
_W_WF1 = _W_W2 + HIDDEN                 # (32,64)  FF.linear1
_W_WF2 = _W_WF1 + D_MODEL               # (64,32)  FF.linear2
W_ROWS = _W_WF2 + HIDDEN                # 384 rows (multiple of 16 for bf16 tiling)

# ---- vector slab (f32) row offsets; every row starts at lane 0 ----
_V_BQ, _V_BK, _V_BATT, _V_B1, _V_B2, _V_BF1, _V_BF2 = 0, 1, 2, 3, 4, 5, 6
_V_G1, _V_BT1, _V_G2, _V_BT2 = 7, 8, 9, 10
_V_MASK = 11                            # N_HEAD rows of 0/1 head masks
_V_PE = 16                              # SEQ rows of positional encoding
V_ROWS = _V_PE + SEQ                    # 24 rows


def _layernorm(x, gamma, beta):
    mean = jnp.mean(x, axis=-1, keepdims=True)
    var = jnp.mean((x - mean) ** 2, axis=-1, keepdims=True)
    return (x - mean) * jax.lax.rsqrt(var + LN_EPS) * gamma + beta


def _make_encoder_kernel(tb):
    """Kernel over one batch tile of `tb` sequences (x block is (tb*SEQ, D_MODEL))."""
    S, D, H, HD, HID = SEQ, D_MODEL, N_HEAD, HEAD_DIM, HIDDEN
    N = tb * S
    f32, bf16 = jnp.float32, jnp.bfloat16

    def kernel(x_ref, w_ref, v_ref, o_ref):
        # ---------------- static lane-0 views into the two slabs ----------------
        wq = w_ref[_W_WQ:_W_WQ + D, 0:D]                    # bf16 (32,32)
        wk = w_ref[_W_WK:_W_WK + D, 0:D]                    # bf16 (32,32)
        w1 = w_ref[_W_W1:_W_W1 + D, 0:2 * HID]              # bf16 (32,128)
        w2 = w_ref[_W_W2:_W_W2 + HID, 0:2 * D]              # bf16 (64,64)
        wf1 = w_ref[_W_WF1:_W_WF1 + D, 0:HID]               # bf16 (32,64)
        wf2 = w_ref[_W_WF2:_W_WF2 + HID, 0:D]               # bf16 (64,32)

        bq = v_ref[_V_BQ:_V_BQ + 1, 0:D]                    # f32 (1,32), pre-scaled
        bk = v_ref[_V_BK:_V_BK + 1, 0:D]
        batt = v_ref[_V_BATT:_V_BATT + 1, 0:D]              # bo + bv @ Wo
        b1 = v_ref[_V_B1:_V_B1 + 1, 0:2 * HID]
        b2 = v_ref[_V_B2:_V_B2 + 1, 0:2 * D]
        bf1 = v_ref[_V_BF1:_V_BF1 + 1, 0:HID]
        bf2 = v_ref[_V_BF2:_V_BF2 + 1, 0:D]
        g1 = v_ref[_V_G1:_V_G1 + 1, 0:D]
        bt1 = v_ref[_V_BT1:_V_BT1 + 1, 0:D]
        g2 = v_ref[_V_G2:_V_G2 + 1, 0:D]
        bt2 = v_ref[_V_BT2:_V_BT2 + 1, 0:D]
        pe = v_ref[_V_PE:_V_PE + S, 0:D]                    # (S,32)

        # ---------------- PositionalEncoding ----------------
        xp3 = x_ref[...].reshape(tb, S, D) + pe[None, :, :]
        xp2 = xp3.reshape(N, D)                              # (N,32) f32
        xp_b = xp2.astype(bf16)

        # ---------------- SelfAttention ----------------
        # q columns are pre-scaled by 1/sqrt(HD); wo is pre-folded into Wvo_h.
        q3 = (jnp.dot(xp_b, wq, preferred_element_type=f32) + bq).reshape(tb, S, D)
        k3 = (jnp.dot(xp_b, wk, preferred_element_type=f32) + bk).reshape(tb, S, D)
        qb = q3.astype(bf16)

        acc = jnp.zeros((tb, S, D), f32)
        for h in range(H):                                   # static loop over heads
            # mask K outside head h (exact); full-32-lane contraction, no 8-lane slices
            mask = v_ref[_V_MASK + h:_V_MASK + h + 1, 0:D]   # (1,32) of 0/1
            kh = (k3 * mask[None, :, :]).astype(bf16)
            logits = jnp.einsum('bqd,bkd->bqk', qb, kh,
                                preferred_element_type=f32)  # (tb,S,S)
            logits = logits - jnp.max(logits, axis=-1, keepdims=True)
            p = jnp.exp(logits)
            p = p / jnp.sum(p, axis=-1, keepdims=True)       # exact softmax divide

            wvo_h = w_ref[_W_WVO + h * D:_W_WVO + (h + 1) * D, 0:D]   # (32,32)
            voh = jnp.dot(xp_b, wvo_h, preferred_element_type=f32)     # (N,32)
            acc = acc + jnp.einsum('bqk,bkd->bqd', p.astype(bf16),
                                   voh.reshape(tb, S, D).astype(bf16),
                                   preferred_element_type=f32)
        attn2 = acc.reshape(N, D) + batt                     # b_attn added once

        # ---------------- norm1(x + attn) ----------------
        xn1 = _layernorm(xp2 + attn2, g1, bt1)

        # ---------------- GatedResidualNetwork (skip = Identity), fused GLUs ----------
        y1 = jnp.dot(xn1.astype(bf16), w1, preferred_element_type=f32) + b1   # (N,128)
        h1 = y1[:, 0:HID] * jax.nn.sigmoid(y1[:, HID:2 * HID])                # (N,64)
        y2 = jnp.dot(h1.astype(bf16), w2, preferred_element_type=f32) + b2    # (N,64)
        grn = y2[:, 0:D] * jax.nn.sigmoid(y2[:, D:2 * D])                     # (N,32)
        grn_out = jnp.maximum(grn + xn1, 0.0)

        # ---------------- norm2(x + gating) ----------------
        xn2 = _layernorm(xn1 + grn_out, g2, bt2)

        # ---------------- PositionwiseFeedForward ----------------
        # TODO(synk): dropout is identity here (eval/inference semantics).
        ff = jnp.maximum(jnp.dot(xn2.astype(bf16), wf1,
                                 preferred_element_type=f32) + bf1, 0.0)
        o_ref[...] = jnp.dot(ff.astype(bf16), wf2, preferred_element_type=f32) + bf2

    return kernel


def encoder_pallas(x, wslab, vslab, *, batch_tile=None):
    """x: (B, S, D). batch_tile lets a large fused batch be split across grid steps
    (and across v7x TensorCores via the 'parallel' axis); default = whole batch."""
    B, S, D = x.shape
    assert S == SEQ and D == D_MODEL
    tb = B if batch_tile is None else batch_tile
    assert B % tb == 0, "batch must be divisible by batch_tile"
    grid = (B // tb,)
    x2 = x.reshape(B * S, D)

    out2 = pl.pallas_call(
        _make_encoder_kernel(tb),
        out_shape=jax.ShapeDtypeStruct((B * S, D), jnp.float32),
        grid=grid,
        in_specs=[pl.BlockSpec((tb * S, D), lambda i: (i, 0)),
                  pl.BlockSpec((W_ROWS, 128), lambda i: (0, 0)),
                  pl.BlockSpec((V_ROWS, 128), lambda i: (0, 0))],
        out_specs=pl.BlockSpec((tb * S, D), lambda i: (i, 0)),
        compiler_params=pltpu.CompilerParams(dimension_semantics=("parallel",)),
    )(x2, wslab, vslab)
    return out2.reshape(B, S, D)


def build_pe(max_len, d_model):
    position = np.arange(max_len, dtype=np.float32)[:, None]
    div_term = np.exp(np.arange(0, d_model, 2, dtype=np.float32)
                      * (-math.log(10000.0) / d_model))
    pe = np.zeros((max_len, d_model), dtype=np.float32)
    pe[:, 0::2] = np.sin(position * div_term)
    pe[:, 1::2] = np.cos(position * div_term)
    return pe


def init_params(key):
    keys = jax.random.split(key, 8)

    def lin(k, din, dout):
        kw, kb = jax.random.split(k)
        w = jax.random.uniform(kw, (din, dout), jnp.float32, -0.1, 0.1)
        b = jax.random.uniform(kb, (1, dout), jnp.float32, -0.1, 0.1)
        return w, b

    wqkv, bqkv = lin(keys[0], D_MODEL, 3 * D_MODEL)   # columns: per-head [q|k|v]
    wo, bo = lin(keys[1], D_MODEL, D_MODEL)
    w1a, b1a = lin(keys[2], D_MODEL, HIDDEN)          # GRN.glu1.fc1
    w1b, b1b = lin(keys[3], D_MODEL, HIDDEN)          # GRN.glu1.fc2
    w2a, b2a = lin(keys[4], HIDDEN, D_MODEL)          # GRN.glu2.fc1
    w2b, b2b = lin(keys[5], HIDDEN, D_MODEL)          # GRN.glu2.fc2
    wf1, bf1 = lin(keys[6], D_MODEL, HIDDEN)          # FF.linear1
    wf2, bf2 = lin(keys[7], HIDDEN, D_MODEL)          # FF.linear2

    g1 = jnp.ones((1, D_MODEL), jnp.float32)
    bt1 = jnp.zeros((1, D_MODEL), jnp.float32)
    g2 = jnp.ones((1, D_MODEL), jnp.float32)
    bt2 = jnp.zeros((1, D_MODEL), jnp.float32)

    return dict(pe=jnp.asarray(build_pe(TIME_WINDOW, D_MODEL)),
                wqkv=wqkv, bqkv=bqkv, wo=wo, bo=bo, g1=g1, bt1=bt1,
                w1a=w1a, b1a=b1a, w1b=w1b, b1b=b1b,
                w2a=w2a, b2a=b2a, w2b=w2b, b2b=b2b,
                g2=g2, bt2=bt2, wf1=wf1, bf1=bf1, wf2=wf2, bf2=bf2)


def pack_slabs(p):
    """One-time preprocessing:
       - split interleaved qkv columns into Wq/Wk/Wv per head, fold 1/sqrt(HD) into q,
       - fold Wo into V: Wvo_h = Wv_h @ Wo_h, b_attn = bo + bv @ Wo,
       - fuse GLU weight pairs, build head masks,
       - pack matmul operands into a bf16 (384,128) slab and vectors/LN/PE/masks into
         an f32 (24,128) slab; every row/matrix starts at lane 0."""
    D, H, HD, HID, S = D_MODEL, N_HEAD, HEAD_DIM, HIDDEN, SEQ
    wqkv = np.asarray(p['wqkv'])
    bqkv = np.asarray(p['bqkv'])[0]
    wo = np.asarray(p['wo'])
    bo = np.asarray(p['bo'])[0]

    Wq = np.zeros((D, D), np.float32); Wk = np.zeros((D, D), np.float32)
    Wv = np.zeros((D, D), np.float32)
    bq = np.zeros(D, np.float32); bk = np.zeros(D, np.float32)
    bv = np.zeros(D, np.float32)
    for h in range(H):
        base = 3 * HD * h
        Wq[:, h * HD:(h + 1) * HD] = wqkv[:, base:base + HD]
        Wk[:, h * HD:(h + 1) * HD] = wqkv[:, base + HD:base + 2 * HD]
        Wv[:, h * HD:(h + 1) * HD] = wqkv[:, base + 2 * HD:base + 3 * HD]
        bq[h * HD:(h + 1) * HD] = bqkv[base:base + HD]
        bk[h * HD:(h + 1) * HD] = bqkv[base + HD:base + 2 * HD]
        bv[h * HD:(h + 1) * HD] = bqkv[base + 2 * HD:base + 3 * HD]
    scale = 1.0 / math.sqrt(HD)
    Wq *= scale
    bq *= scale

    # fold wo into V: per-head Wvo_h = Wv_h @ Wo_h; bias folded once (softmax rows sum to 1)
    wvo = np.zeros((H * D, D), np.float32)
    for h in range(H):
        wvo[h * D:(h + 1) * D, :] = Wv[:, h * HD:(h + 1) * HD] @ wo[h * HD:(h + 1) * HD, :]
    b_attn = bo + bv @ wo

    w1 = np.concatenate([np.asarray(p['w1a']), np.asarray(p['w1b'])], axis=1)  # (32,128)
    b1 = np.concatenate([np.asarray(p['b1a']), np.asarray(p['b1b'])], axis=1)[0]
    w2 = np.concatenate([np.asarray(p['w2a']), np.asarray(p['w2b'])], axis=1)  # (64,64)
    b2 = np.concatenate([np.asarray(p['b2a']), np.asarray(p['b2b'])], axis=1)[0]

    ws = np.zeros((W_ROWS, 128), np.float32)
    ws[_W_WQ:_W_WQ + D, 0:D] = Wq
    ws[_W_WK:_W_WK + D, 0:D] = Wk
    ws[_W_WVO:_W_WVO + H * D, 0:D] = wvo
    ws[_W_W1:_W_W1 + D, 0:2 * HID] = w1
    ws[_W_W2:_W_W2 + HID, 0:2 * D] = w2
    ws[_W_WF1:_W_WF1 + D, 0:HID] = np.asarray(p['wf1'])
    ws[_W_WF2:_W_WF2 + HID, 0:D] = np.asarray(p['wf2'])

    vs = np.zeros((V_ROWS, 128), np.float32)
    vs[_V_BQ, 0:D] = bq
    vs[_V_BK, 0:D] = bk
    vs[_V_BATT, 0:D] = b_attn
    vs[_V_B1, 0:2 * HID] = b1
    vs[_V_B2, 0:2 * D] = b2
    vs[_V_BF1, 0:HID] = np.asarray(p['bf1'])[0]
    vs[_V_BF2, 0:D] = np.asarray(p['bf2'])[0]
    vs[_V_G1, 0:D] = np.asarray(p['g1'])[0]
    vs[_V_BT1, 0:D] = np.asarray(p['bt1'])[0]
    vs[_V_G2, 0:D] = np.asarray(p['g2'])[0]
    vs[_V_BT2, 0:D] = np.asarray(p['bt2'])[0]
    for h in range(H):
        vs[_V_MASK + h, h * HD:(h + 1) * HD] = 1.0
    vs[_V_PE:_V_PE + S, 0:D] = np.asarray(p['pe'])[:S]

    return jnp.asarray(ws, dtype=jnp.bfloat16), jnp.asarray(vs, dtype=jnp.float32)


def reference(x, p):
    """Pure-JAX f32 reference mirroring the PyTorch forward (original qkv layout)."""
    B, S, D = x.shape
    xp = x + p['pe'][:S][None]
    qkv = xp @ p['wqkv'] + p['bqkv']
    qkv = qkv.reshape(B, S, N_HEAD, 3 * HEAD_DIM).transpose(0, 2, 1, 3)
    q, k, v = (qkv[..., :HEAD_DIM],
               qkv[..., HEAD_DIM:2 * HEAD_DIM],
               qkv[..., 2 * HEAD_DIM:])
    logits = q @ jnp.swapaxes(k, -2, -1) / math.sqrt(HEAD_DIM)
    attn = jax.nn.softmax(logits, axis=-1)
    vals = (attn @ v).transpose(0, 2, 1, 3).reshape(B, S, D)
    attn_out = vals @ p['wo'] + p['bo']

    def ln(t, g, b):
        m = t.mean(-1, keepdims=True)
        var = ((t - m) ** 2).mean(-1, keepdims=True)
        return (t - m) / jnp.sqrt(var + LN_EPS) * g + b

    xn1 = ln(xp + attn_out, p['g1'], p['bt1'])
    h1 = (xn1 @ p['w1a'] + p['b1a']) * jax.nn.sigmoid(xn1 @ p['w1b'] + p['b1b'])
    grn = (h1 @ p['w2a'] + p['b2a']) * jax.nn.sigmoid(h1 @ p['w2b'] + p['b2b'])
    grn_out = jax.nn.relu(grn + xn1)
    xn2 = ln(xn1 + grn_out, p['g2'], p['bt2'])
    ff = jax.nn.relu(xn2 @ p['wf1'] + p['bf1'])
    return ff @ p['wf2'] + p['bf2']


if __name__ == "__main__":
    key = jax.random.PRNGKey(0)
    kx, kp = jax.random.split(key)
    x = jax.random.normal(kx, (BATCH, SEQ, D_MODEL), jnp.float32)
    params = init_params(kp)
    wslab, vslab = pack_slabs(params)

    out = jax.block_until_ready(encoder_pallas(x, wslab, vslab))
    ref = reference(x, params)
    assert out.shape == (BATCH, SEQ, D_MODEL)
    # 1e-2 tolerance: bf16 MXU operands (exact softmax divide, all other math f32).
    if not np.allclose(np.asarray(out), np.asarray(ref), atol=1e-2, rtol=1e-2):
        err = float(np.max(np.abs(np.asarray(out) - np.asarray(ref))))
        raise AssertionError(f"Pallas encoder output mismatch vs reference (max abs err {err})")
    print("KERNEL_OK")
</pallas_src>

<mosaic_0001>
module attributes {stable_mosaic.version = 11 : i64} {
  func.func @kernel(%arg0: i32, %arg1: memref<16x32xf32, #tpu.memory_space<vmem>>, %arg2: memref<384x128xbf16, #tpu.memory_space<vmem>>, %arg3: memref<24x128xf32, #tpu.memory_space<vmem>>, %arg4: memref<16x32xf32, #tpu.memory_space<vmem>>) attributes {dimension_semantics = [#tpu.dimension_semantics<parallel>], iteration_bounds = array<i64: 1>, scalar_prefetch = 0 : i64, scratch_operands = 0 : i64, tpu.core_type = #tpu.core_type<tc>, window_params = [{transform_indices = @transform_0, window_bounds = array<i64: 16, 32>}, {pipeline_mode = #tpu.pipeline_mode<synchronous>, transform_indices = @transform_1, window_bounds = array<i64: 384, 128>}, {pipeline_mode = #tpu.pipeline_mode<synchronous>, transform_indices = @transform_2, window_bounds = array<i64: 24, 128>}, {transform_indices = @transform_3, window_bounds = array<i64: 16, 32>}]} {
    %c0 = arith.constant 0 : index
    %c0_0 = arith.constant 0 : index
    %0 = vector.load %arg2[%c0, %c0_0] : memref<384x128xbf16, #tpu.memory_space<vmem>>, vector<32x32xbf16>
    %c32 = arith.constant 32 : index
    %c0_1 = arith.constant 0 : index
    %1 = vector.load %arg2[%c32, %c0_1] : memref<384x128xbf16, #tpu.memory_space<vmem>>, vector<32x32xbf16>
    %c192 = arith.constant 192 : index
    %c0_2 = arith.constant 0 : index
    %2 = vector.load %arg2[%c192, %c0_2] : memref<384x128xbf16, #tpu.memory_space<vmem>>, vector<32x128xbf16>
    %c224 = arith.constant 224 : index
    %c0_3 = arith.constant 0 : index
    %3 = vector.load %arg2[%c224, %c0_3] : memref<384x128xbf16, #tpu.memory_space<vmem>>, vector<64x64xbf16>
    %c288 = arith.constant 288 : index
    %c0_4 = arith.constant 0 : index
    %4 = vector.load %arg2[%c288, %c0_4] : memref<384x128xbf16, #tpu.memory_space<vmem>>, vector<32x64xbf16>
    %c320 = arith.constant 320 : index
    %c0_5 = arith.constant 0 : index
    %5 = vector.load %arg2[%c320, %c0_5] : memref<384x128xbf16, #tpu.memory_space<vmem>>, vector<64x32xbf16>
    %c0_6 = arith.constant 0 : index
    %c0_7 = arith.constant 0 : index
    %6 = vector.load %arg3[%c0_6, %c0_7] : memref<24x128xf32, #tpu.memory_space<vmem>>, vector<1x32xf32>
    %c1 = arith.constant 1 : index
    %c0_8 = arith.constant 0 : index
    %7 = vector.load %arg3[%c1, %c0_8] : memref<24x128xf32, #tpu.memory_space<vmem>>, vector<1x32xf32>
    %c2 = arith.constant 2 : index
    %c0_9 = arith.constant 0 : index
    %8 = vector.load %arg3[%c2, %c0_9] : memref<24x128xf32, #tpu.memory_space<vmem>>, vector<1x32xf32>
    %c3 = arith.constant 3 : index
    %c0_10 = arith.constant 0 : index
    %9 = vector.load %arg3[%c3, %c0_10] : memref<24x128xf32, #tpu.memory_space<vmem>>, vector<1x128xf32>
    %c4 = arith.constant 4 : index
    %c0_11 = arith.constant 0 : index
    %10 = vector.load %arg3[%c4, %c0_11] : memref<24x128xf32, #tpu.memory_space<vmem>>, vector<1x64xf32>
    %c5 = arith.constant 5 : index
    %c0_12 = arith.constant 0 : index
    %11 = vector.load %arg3[%c5, %c0_12] : memref<24x128xf32, #tpu.memory_space<vmem>>, vector<1x64xf32>
    %c6 = arith.constant 6 : index
    %c0_13 = arith.constant 0 : index
    %12 = vector.load %arg3[%c6, %c0_13] : memref<24x128xf32, #tpu.memory_space<vmem>>, vector<1x32xf32>
    %c7 = arith.constant 7 : index
    %c0_14 = arith.constant 0 : index
    %13 = vector.load %arg3[%c7, %c0_14] : memref<24x128xf32, #tpu.memory_space<vmem>>, vector<1x32xf32>
    %c8 = arith.constant 8 : index
    %c0_15 = arith.constant 0 : index
    %14 = vector.load %arg3[%c8, %c0_15] : memref<24x128xf32, #tpu.memory_space<vmem>>, vector<1x32xf32>
    %c9 = arith.constant 9 : index
    %c0_16 = arith.constant 0 : index
    %15 = vector.load %arg3[%c9, %c0_16] : memref<24x128xf32, #tpu.memory_space<vmem>>, vector<1x32xf32>
    %c10 = arith.constant 10 : index
    %c0_17 = arith.constant 0 : index
    %16 = vector.load %arg3[%c10, %c0_17] : memref<24x128xf32, #tpu.memory_space<vmem>>, vector<1x32xf32>
    %c16 = arith.constant 16 : index
    %c0_18 = arith.constant 0 : index
    %17 = vector.load %arg3[%c16, %c0_18] : memref<24x128xf32, #tpu.memory_space<vmem>>, vector<8x32xf32>
    %c0_19 = arith.constant 0 : index
    %c0_20 = arith.constant 0 : index
    %18 = vector.load %arg1[%c0_19, %c0_20] : memref<16x32xf32, #tpu.memory_space<vmem>>, vector<16x32xf32>
    %19 = vector.shape_cast %18 : vector<16x32xf32> to vector<2x8x32xf32>
    %20 = vector.shape_cast %17 : vector<8x32xf32> to vector<1x8x32xf32>
    %21 = vector.broadcast %20 : vector<1x8x32xf32> to vector<2x8x32xf32>
    %22 = arith.addf %19, %21 : vector<2x8x32xf32>
    %23 = vector.shape_cast %22 : vector<2x8x32xf32> to vector<16x32xf32>
    %24 = arith.truncf %23 : vector<16x32xf32> to vector<16x32xbf16>
    %cst = arith.constant dense<0.000000e+00> : vector<16x32xf32>
    %25 = tpu.matmul %24, %0, %cst {dimension_numbers = #tpu.dot_dimension_numbers<[1], [0], [0], [1], [0, 0, 1, 1], [], []>} : vector<16x32xbf16>, vector<32x32xbf16>, vector<16x32xf32> -> vector<16x32xf32>
    %26 = vector.broadcast %6 : vector<1x32xf32> to vector<16x32xf32>
    %27 = arith.addf %25, %26 : vector<16x32xf32>
    %28 = vector.shape_cast %27 : vector<16x32xf32> to vector<2x8x32xf32>
    %cst_21 = arith.constant dense<0.000000e+00> : vector<16x32xf32>
    %29 = tpu.matmul %24, %1, %cst_21 {dimension_numbers = #tpu.dot_dimension_numbers<[1], [0], [0], [1], [0, 0, 1, 1], [], []>} : vector<16x32xbf16>, vector<32x32xbf16>, vector<16x32xf32> -> vector<16x32xf32>
    %30 = vector.broadcast %7 : vector<1x32xf32> to vector<16x32xf32>
    %31 = arith.addf %29, %30 : vector<16x32xf32>
    %32 = vector.shape_cast %31 : vector<16x32xf32> to vector<2x8x32xf32>
    %33 = arith.truncf %28 : vector<2x8x32xf32> to vector<2x8x32xbf16>
    %cst_22 = arith.constant 0.000000e+00 : f32
    %34 = vector.broadcast %cst_22 : f32 to vector<2x8x32xf32>
    %c11 = arith.constant 11 : index
    %c0_23 = arith.constant 0 : index
    %35 = vector.load %arg3[%c11, %c0_23] : memref<24x128xf32, #tpu.memory_space<vmem>>, vector<1x32xf32>
    %36 = vector.shape_cast %35 : vector<1x32xf32> to vector<1x1x32xf32>
    %37 = vector.broadcast %36 : vector<1x1x32xf32> to vector<2x8x32xf32>
    %38 = arith.mulf %32, %37 : vector<2x8x32xf32>
    %39 = arith.truncf %38 : vector<2x8x32xf32> to vector<2x8x32xbf16>
    "tpu.trace_start"() <{level = 10 : i32, message = "bqd,bkd->bqk"}> : () -> ()
    %cst_24 = arith.constant dense<0.000000e+00> : vector<2x8x8xf32>
    %40 = tpu.matmul %33, %39, %cst_24 {dimension_numbers = #tpu.dot_dimension_numbers<[2], [2], [1], [1], [0, 0, 0, 1, 1, 1], [0], [0]>} : vector<2x8x32xbf16>, vector<2x8x32xbf16>, vector<2x8x8xf32> -> vector<2x8x8xf32>
    "tpu.trace_stop"() : () -> ()
    %cst_25 = arith.constant dense<0xFF800000> : vector<2x8xf32>
    %41 = vector.multi_reduction <maximumf>, %40, %cst_25 [2] : vector<2x8x8xf32> to vector<2x8xf32>
    %42 = vector.shape_cast %41 : vector<2x8xf32> to vector<2x8x1xf32>
    %43 = vector.broadcast %42 : vector<2x8x1xf32> to vector<2x8x8xf32>
    %44 = arith.subf %40, %43 : vector<2x8x8xf32>
    %45 = math.exp %44 : vector<2x8x8xf32>
    %cst_26 = arith.constant dense<0.000000e+00> : vector<2x8xf32>
    %46 = vector.multi_reduction <add>, %45, %cst_26 [2] : vector<2x8x8xf32> to vector<2x8xf32>
    %47 = vector.shape_cast %46 : vector<2x8xf32> to vector<2x8x1xf32>
    %48 = vector.broadcast %47 : vector<2x8x1xf32> to vector<2x8x8xf32>
    %49 = arith.divf %45, %48 : vector<2x8x8xf32>
    %c64 = arith.constant 64 : index
    %c0_27 = arith.constant 0 : index
    %50 = vector.load %arg2[%c64, %c0_27] : memref<384x128xbf16, #tpu.memory_space<vmem>>, vector<32x32xbf16>
    %cst_28 = arith.constant dense<0.000000e+00> : vector<16x32xf32>
    %51 = tpu.matmul %24, %50, %cst_28 {dimension_numbers = #tpu.dot_dimension_numbers<[1], [0], [0], [1], [0, 0, 1, 1], [], []>} : vector<16x32xbf16>, vector<32x32xbf16>, vector<16x32xf32> -> vector<16x32xf32>
    %52 = arith.truncf %49 : vector<2x8x8xf32> to vector<2x8x8xbf16>
    %53 = vector.shape_cast %51 : vector<16x32xf32> to vector<2x8x32xf32>
    %54 = arith.truncf %53 : vector<2x8x32xf32> to vector<2x8x32xbf16>
    "tpu.trace_start"() <{level = 10 : i32, message = "bqk,bkd->bqd"}> : () -> ()
    %cst_29 = arith.constant dense<0.000000e+00> : vector<2x8x32xf32>
    %55 = tpu.matmul %52, %54, %cst_29 {dimension_numbers = #tpu.dot_dimension_numbers<[2], [1], [1], [2], [0, 0, 0, 1, 1, 2], [0], [0]>} : vector<2x8x8xbf16>, vector<2x8x32xbf16>, vector<2x8x32xf32> -> vector<2x8x32xf32>
    "tpu.trace_stop"() : () -> ()
    %56 = arith.addf %34, %55 : vector<2x8x32xf32>
    %c12 = arith.constant 12 : index
    %c0_30 = arith.constant 0 : index
    %57 = vector.load %arg3[%c12, %c0_30] : memref<24x128xf32, #tpu.memory_space<vmem>>, vector<1x32xf32>
    %58 = vector.shape_cast %57 : vector<1x32xf32> to vector<1x1x32xf32>
    %59 = vector.broadcast %58 : vector<1x1x32xf32> to vector<2x8x32xf32>
    %60 = arith.mulf %32, %59 : vector<2x8x32xf32>
    %61 = arith.truncf %60 : vector<2x8x32xf32> to vector<2x8x32xbf16>
    "tpu.trace_start"() <{level = 10 : i32, message = "bqd,bkd->bqk"}> : () -> ()
    %cst_31 = arith.constant dense<0.000000e+00> : vector<2x8x8xf32>
    %62 = tpu.matmul %33, %61, %cst_31 {dimension_numbers = #tpu.dot_dimension_numbers<[2], [2], [1], [1], [0, 0, 0, 1, 1, 1], [0], [0]>} : vector<2x8x32xbf16>, vector<2x8x32xbf16>, vector<2x8x8xf32> -> vector<2x8x8xf32>
    "tpu.trace_stop"() : () -> ()
    %cst_32 = arith.constant dense<0xFF800000> : vector<2x8xf32>
    %63 = vector.multi_reduction <maximumf>, %62, %cst_32 [2] : vector<2x8x8xf32> to vector<2x8xf32>
    %64 = vector.shape_cast %63 : vector<2x8xf32> to vector<2x8x1xf32>
    %65 = vector.broadcast %64 : vector<2x8x1xf32> to vector<2x8x8xf32>
    %66 = arith.subf %62, %65 : vector<2x8x8xf32>
    %67 = math.exp %66 : vector<2x8x8xf32>
    %cst_33 = arith.constant dense<0.000000e+00> : vector<2x8xf32>
    %68 = vector.multi_reduction <add>, %67, %cst_33 [2] : vector<2x8x8xf32> to vector<2x8xf32>
    %69 = vector.shape_cast %68 : vector<2x8xf32> to vector<2x8x1xf32>
    %70 = vector.broadcast %69 : vector<2x8x1xf32> to vector<2x8x8xf32>
    %71 = arith.divf %67, %70 : vector<2x8x8xf32>
    %c96 = arith.constant 96 : index
    %c0_34 = arith.constant 0 : index
    %72 = vector.load %arg2[%c96, %c0_34] : memref<384x128xbf16, #tpu.memory_space<vmem>>, vector<32x32xbf16>
    %cst_35 = arith.constant dense<0.000000e+00> : vector<16x32xf32>
    %73 = tpu.matmul %24, %72, %cst_35 {dimension_numbers = #tpu.dot_dimension_numbers<[1], [0], [0], [1], [0, 0, 1, 1], [], []>} : vector<16x32xbf16>, vector<32x32xbf16>, vector<16x32xf32> -> vector<16x32xf32>
    %74 = arith.truncf %71 : vector<2x8x8xf32> to vector<2x8x8xbf16>
    %75 = vector.shape_cast %73 : vector<16x32xf32> to vector<2x8x32xf32>
    %76 = arith.truncf %75 : vector<2x8x32xf32> to vector<2x8x32xbf16>
    "tpu.trace_start"() <{level = 10 : i32, message = "bqk,bkd->bqd"}> : () -> ()
    %cst_36 = arith.constant dense<0.000000e+00> : vector<2x8x32xf32>
    %77 = tpu.matmul %74, %76, %cst_36 {dimension_numbers = #tpu.dot_dimension_numbers<[2], [1], [1], [2], [0, 0, 0, 1, 1, 2], [0], [0]>} : vector<2x8x8xbf16>, vector<2x8x32xbf16>, vector<2x8x32xf32> -> vector<2x8x32xf32>
    "tpu.trace_stop"() : () -> ()
    %78 = arith.addf %56, %77 : vector<2x8x32xf32>
    %c13 = arith.constant 13 : index
    %c0_37 = arith.constant 0 : index
    %79 = vector.load %arg3[%c13, %c0_37] : memref<24x128xf32, #tpu.memory_space<vmem>>, vector<1x32xf32>
    %80 = vector.shape_cast %79 : vector<1x32xf32> to vector<1x1x32xf32>
    %81 = vector.broadcast %80 : vector<1x1x32xf32> to vector<2x8x32xf32>
    %82 = arith.mulf %32, %81 : vector<2x8x32xf32>
    %83 = arith.truncf %82 : vector<2x8x32xf32> to vector<2x8x32xbf16>
    "tpu.trace_start"() <{level = 10 : i32, message = "bqd,bkd->bqk"}> : () -> ()
    %cst_38 = arith.constant dense<0.000000e+00> : vector<2x8x8xf32>
    %84 = tpu.matmul %33, %83, %cst_38 {dimension_numbers = #tpu.dot_dimension_numbers<[2], [2], [1], [1], [0, 0, 0, 1, 1, 1], [0], [0]>} : vector<2x8x32xbf16>, vector<2x8x32xbf16>, vector<2x8x8xf32> -> vector<2x8x8xf32>
    "tpu.trace_stop"() : () -> ()
    %cst_39 = arith.constant dense<0xFF800000> : vector<2x8xf32>
    %85 = vector.multi_reduction <maximumf>, %84, %cst_39 [2] : vector<2x8x8xf32> to vector<2x8xf32>
    %86 = vector.shape_cast %85 : vector<2x8xf32> to vector<2x8x1xf32>
    %87 = vector.broadcast %86 : vector<2x8x1xf32> to vector<2x8x8xf32>
    %88 = arith.subf %84, %87 : vector<2x8x8xf32>
    %89 = math.exp %88 : vector<2x8x8xf32>
    %cst_40 = arith.constant dense<0.000000e+00> : vector<2x8xf32>
    %90 = vector.multi_reduction <add>, %89, %cst_40 [2] : vector<2x8x8xf32> to vector<2x8xf32>
    %91 = vector.shape_cast %90 : vector<2x8xf32> to vector<2x8x1xf32>
    %92 = vector.broadcast %91 : vector<2x8x1xf32> to vector<2x8x8xf32>
    %93 = arith.divf %89, %92 : vector<2x8x8xf32>
    %c128 = arith.constant 128 : index
    %c0_41 = arith.constant 0 : index
    %94 = vector.load %arg2[%c128, %c0_41] : memref<384x128xbf16, #tpu.memory_space<vmem>>, vector<32x32xbf16>
    %cst_42 = arith.constant dense<0.000000e+00> : vector<16x32xf32>
    %95 = tpu.matmul %24, %94, %cst_42 {dimension_numbers = #tpu.dot_dimension_numbers<[1], [0], [0], [1], [0, 0, 1, 1], [], []>} : vector<16x32xbf16>, vector<32x32xbf16>, vector<16x32xf32> -> vector<16x32xf32>
    %96 = arith.truncf %93 : vector<2x8x8xf32> to vector<2x8x8xbf16>
    %97 = vector.shape_cast %95 : vector<16x32xf32> to vector<2x8x32xf32>
    %98 = arith.truncf %97 : vector<2x8x32xf32> to vector<2x8x32xbf16>
    "tpu.trace_start"() <{level = 10 : i32, message = "bqk,bkd->bqd"}> : () -> ()
    %cst_43 = arith.constant dense<0.000000e+00> : vector<2x8x32xf32>
    %99 = tpu.matmul %96, %98, %cst_43 {dimension_numbers = #tpu.dot_dimension_numbers<[2], [1], [1], [2], [0, 0, 0, 1, 1, 2], [0], [0]>} : vector<2x8x8xbf16>, vector<2x8x32xbf16>, vector<2x8x32xf32> -> vector<2x8x32xf32>
    "tpu.trace_stop"() : () -> ()
    %100 = arith.addf %78, %99 : vector<2x8x32xf32>
    %c14 = arith.constant 14 : index
    %c0_44 = arith.constant 0 : index
    %101 = vector.load %arg3[%c14, %c0_44] : memref<24x128xf32, #tpu.memory_space<vmem>>, vector<1x32xf32>
    %102 = vector.shape_cast %101 : vector<1x32xf32> to vector<1x1x32xf32>
    %103 = vector.broadcast %102 : vector<1x1x32xf32> to vector<2x8x32xf32>
    %104 = arith.mulf %32, %103 : vector<2x8x32xf32>
    %105 = arith.truncf %104 : vector<2x8x32xf32> to vector<2x8x32xbf16>
    "tpu.trace_start"() <{level = 10 : i32, message = "bqd,bkd->bqk"}> : () -> ()
    %cst_45 = arith.constant dense<0.000000e+00> : vector<2x8x8xf32>
    %106 = tpu.matmul %33, %105, %cst_45 {dimension_numbers = #tpu.dot_dimension_numbers<[2], [2], [1], [1], [0, 0, 0, 1, 1, 1], [0], [0]>} : vector<2x8x32xbf16>, vector<2x8x32xbf16>, vector<2x8x8xf32> -> vector<2x8x8xf32>
    "tpu.trace_stop"() : () -> ()
    %cst_46 = arith.constant dense<0xFF800000> : vector<2x8xf32>
    %107 = vector.multi_reduction <maximumf>, %106, %cst_46 [2] : vector<2x8x8xf32> to vector<2x8xf32>
    %108 = vector.shape_cast %107 : vector<2x8xf32> to vector<2x8x1xf32>
    %109 = vector.broadcast %108 : vector<2x8x1xf32> to vector<2x8x8xf32>
    %110 = arith.subf %106, %109 : vector<2x8x8xf32>
    %111 = math.exp %110 : vector<2x8x8xf32>
    %cst_47 = arith.constant dense<0.000000e+00> : vector<2x8xf32>
    %112 = vector.multi_reduction <add>, %111, %cst_47 [2] : vector<2x8x8xf32> to vector<2x8xf32>
    %113 = vector.shape_cast %112 : vector<2x8xf32> to vector<2x8x1xf32>
    %114 = vector.broadcast %113 : vector<2x8x1xf32> to vector<2x8x8xf32>
    %115 = arith.divf %111, %114 : vector<2x8x8xf32>
    %c160 = arith.constant 160 : index
    %c0_48 = arith.constant 0 : index
    %116 = vector.load %arg2[%c160, %c0_48] : memref<384x128xbf16, #tpu.memory_space<vmem>>, vector<32x32xbf16>
    %cst_49 = arith.constant dense<0.000000e+00> : vector<16x32xf32>
    %117 = tpu.matmul %24, %116, %cst_49 {dimension_numbers = #tpu.dot_dimension_numbers<[1], [0], [0], [1], [0, 0, 1, 1], [], []>} : vector<16x32xbf16>, vector<32x32xbf16>, vector<16x32xf32> -> vector<16x32xf32>
    %118 = arith.truncf %115 : vector<2x8x8xf32> to vector<2x8x8xbf16>
    %119 = vector.shape_cast %117 : vector<16x32xf32> to vector<2x8x32xf32>
    %120 = arith.truncf %119 : vector<2x8x32xf32> to vector<2x8x32xbf16>
    "tpu.trace_start"() <{level = 10 : i32, message = "bqk,bkd->bqd"}> : () -> ()
    %cst_50 = arith.constant dense<0.000000e+00> : vector<2x8x32xf32>
    %121 = tpu.matmul %118, %120, %cst_50 {dimension_numbers = #tpu.dot_dimension_numbers<[2], [1], [1], [2], [0, 0, 0, 1, 1, 2], [0], [0]>} : vector<2x8x8xbf16>, vector<2x8x32xbf16>, vector<2x8x32xf32> -> vector<2x8x32xf32>
    "tpu.trace_stop"() : () -> ()
    %122 = arith.addf %100, %121 : vector<2x8x32xf32>
    %123 = vector.shape_cast %122 : vector<2x8x32xf32> to vector<16x32xf32>
    %124 = vector.broadcast %8 : vector<1x32xf32> to vector<16x32xf32>
    %125 = arith.addf %123, %124 : vector<16x32xf32>
    %126 = arith.addf %23, %125 : vector<16x32xf32>
    %cst_51 = arith.constant dense<0.000000e+00> : vector<16xf32>
    %127 = vector.multi_reduction <add>, %126, %cst_51 [1] : vector<16x32xf32> to vector<16xf32>
    %128 = vector.shape_cast %127 : vector<16xf32> to vector<16x1xf32>
    %cst_52 = arith.constant 3.200000e+01 : f32
    %129 = vector.broadcast %cst_52 : f32 to vector<16x1xf32>
    %130 = arith.divf %128, %129 : vector<16x1xf32>
    %131 = vector.broadcast %130 : vector<16x1xf32> to vector<16x32xf32>
    %132 = arith.subf %126, %131 : vector<16x32xf32>
    %133 = arith.mulf %132, %132 : vector<16x32xf32>
    %cst_53 = arith.constant dense<0.000000e+00> : vector<16xf32>
    %134 = vector.multi_reduction <add>, %133, %cst_53 [1] : vector<16x32xf32> to vector<16xf32>
    %135 = vector.shape_cast %134 : vector<16xf32> to vector<16x1xf32>
    %cst_54 = arith.constant 3.200000e+01 : f32
    %136 = vector.broadcast %cst_54 : f32 to vector<16x1xf32>
    %137 = arith.divf %135, %136 : vector<16x1xf32>
    %138 = vector.broadcast %130 : vector<16x1xf32> to vector<16x32xf32>
    %139 = arith.subf %126, %138 : vector<16x32xf32>
    %cst_55 = arith.constant 9.99999974E-6 : f32
    %140 = vector.broadcast %cst_55 : f32 to vector<16x1xf32>
    %141 = arith.addf %137, %140 : vector<16x1xf32>
    %142 = math.rsqrt %141 : vector<16x1xf32>
    %143 = vector.broadcast %142 : vector<16x1xf32> to vector<16x32xf32>
    %144 = arith.mulf %139, %143 : vector<16x32xf32>
    %145 = vector.broadcast %13 : vector<1x32xf32> to vector<16x32xf32>
    %146 = arith.mulf %144, %145 : vector<16x32xf32>
    %147 = vector.broadcast %14 : vector<1x32xf32> to vector<16x32xf32>
    %148 = arith.addf %146, %147 : vector<16x32xf32>
    %149 = arith.truncf %148 : vector<16x32xf32> to vector<16x32xbf16>
    %cst_56 = arith.constant dense<0.000000e+00> : vector<16x128xf32>
    %150 = tpu.matmul %149, %2, %cst_56 {dimension_numbers = #tpu.dot_dimension_numbers<[1], [0], [0], [1], [0, 0, 1, 1], [], []>} : vector<16x32xbf16>, vector<32x128xbf16>, vector<16x128xf32> -> vector<16x128xf32>
    %151 = vector.broadcast %9 : vector<1x128xf32> to vector<16x128xf32>
    %152 = arith.addf %150, %151 : vector<16x128xf32>
    %153 = vector.extract_strided_slice %152 {offsets = [0, 0], sizes = [16, 64], strides = [1, 1]} : vector<16x128xf32> to vector<16x64xf32>
    %154 = vector.extract_strided_slice %152 {offsets = [0, 64], sizes = [16, 64], strides = [1, 1]} : vector<16x128xf32> to vector<16x64xf32>
    %155 = arith.negf %154 : vector<16x64xf32>
    %156 = math.exp %155 : vector<16x64xf32>
    %cst_57 = arith.constant 1.000000e+00 : f32
    %157 = vector.broadcast %cst_57 : f32 to vector<16x64xf32>
    %158 = arith.addf %157, %156 : vector<16x64xf32>
    %159 = arith.divf %157, %158 : vector<16x64xf32>
    %160 = arith.mulf %153, %159 : vector<16x64xf32>
    %161 = arith.truncf %160 : vector<16x64xf32> to vector<16x64xbf16>
    %cst_58 = arith.constant dense<0.000000e+00> : vector<16x64xf32>
    %162 = tpu.matmul %161, %3, %cst_58 {dimension_numbers = #tpu.dot_dimension_numbers<[1], [0], [0], [1], [0, 0, 1, 1], [], []>} : vector<16x64xbf16>, vector<64x64xbf16>, vector<16x64xf32> -> vector<16x64xf32>
    %163 = vector.broadcast %10 : vector<1x64xf32> to vector<16x64xf32>
    %164 = arith.addf %162, %163 : vector<16x64xf32>
    %165 = vector.extract_strided_slice %164 {offsets = [0, 0], sizes = [16, 32], strides = [1, 1]} : vector<16x64xf32> to vector<16x32xf32>
    %166 = vector.extract_strided_slice %164 {offsets = [0, 32], sizes = [16, 32], strides = [1, 1]} : vector<16x64xf32> to vector<16x32xf32>
    %167 = arith.negf %166 : vector<16x32xf32>
    %168 = math.exp %167 : vector<16x32xf32>
    %cst_59 = arith.constant 1.000000e+00 : f32
    %169 = vector.broadcast %cst_59 : f32 to vector<16x32xf32>
    %170 = arith.addf %169, %168 : vector<16x32xf32>
    %171 = arith.divf %169, %170 : vector<16x32xf32>
    %172 = arith.mulf %165, %171 : vector<16x32xf32>
    %173 = arith.addf %172, %148 : vector<16x32xf32>
    %cst_60 = arith.constant 0.000000e+00 : f32
    %174 = vector.broadcast %cst_60 : f32 to vector<16x32xf32>
    %175 = arith.maximumf %173, %174 : vector<16x32xf32>
    %176 = arith.addf %148, %175 : vector<16x32xf32>
    %cst_61 = arith.constant dense<0.000000e+00> : vector<16xf32>
    %177 = vector.multi_reduction <add>, %176, %cst_61 [1] : vector<16x32xf32> to vector<16xf32>
    %178 = vector.shape_cast %177 : vector<16xf32> to vector<16x1xf32>
    %cst_62 = arith.constant 3.200000e+01 : f32
    %179 = vector.broadcast %cst_62 : f32 to vector<16x1xf32>
    %180 = arith.divf %178, %179 : vector<16x1xf32>
    %181 = vector.broadcast %180 : vector<16x1xf32> to vector<16x32xf32>
    %182 = arith.subf %176, %181 : vector<16x32xf32>
    %183 = arith.mulf %182, %182 : vector<16x32xf32>
    %cst_63 = arith.constant dense<0.000000e+00> : vector<16xf32>
    %184 = vector.multi_reduction <add>, %183, %cst_63 [1] : vector<16x32xf32> to vector<16xf32>
    %185 = vector.shape_cast %184 : vector<16xf32> to vector<16x1xf32>
    %cst_64 = arith.constant 3.200000e+01 : f32
    %186 = vector.broadcast %cst_64 : f32 to vector<16x1xf32>
    %187 = arith.divf %185, %186 : vector<16x1xf32>
    %188 = vector.broadcast %180 : vector<16x1xf32> to vector<16x32xf32>
    %189 = arith.subf %176, %188 : vector<16x32xf32>
    %cst_65 = arith.constant 9.99999974E-6 : f32
    %190 = vector.broadcast %cst_65 : f32 to vector<16x1xf32>
    %191 = arith.addf %187, %190 : vector<16x1xf32>
    %192 = math.rsqrt %191 : vector<16x1xf32>
    %193 = vector.broadcast %192 : vector<16x1xf32> to vector<16x32xf32>
    %194 = arith.mulf %189, %193 : vector<16x32xf32>
    %195 = vector.broadcast %15 : vector<1x32xf32> to vector<16x32xf32>
    %196 = arith.mulf %194, %195 : vector<16x32xf32>
    %197 = vector.broadcast %16 : vector<1x32xf32> to vector<16x32xf32>
    %198 = arith.addf %196, %197 : vector<16x32xf32>
    %199 = arith.truncf %198 : vector<16x32xf32> to vector<16x32xbf16>
    %cst_66 = arith.constant dense<0.000000e+00> : vector<16x64xf32>
    %200 = tpu.matmul %199, %4, %cst_66 {dimension_numbers = #tpu.dot_dimension_numbers<[1], [0], [0], [1], [0, 0, 1, 1], [], []>} : vector<16x32xbf16>, vector<32x64xbf16>, vector<16x64xf32> -> vector<16x64xf32>
    %201 = vector.broadcast %11 : vector<1x64xf32> to vector<16x64xf32>
    %202 = arith.addf %200, %201 : vector<16x64xf32>
    %cst_67 = arith.constant 0.000000e+00 : f32
    %203 = vector.broadcast %cst_67 : f32 to vector<16x64xf32>
    %204 = arith.maximumf %202, %203 : vector<16x64xf32>
    %205 = arith.truncf %204 : vector<16x64xf32> to vector<16x64xbf16>
    %cst_68 = arith.constant dense<0.000000e+00> : vector<16x32xf32>
    %206 = tpu.matmul %205, %5, %cst_68 {dimension_numbers = #tpu.dot_dimension_numbers<[1], [0], [0], [1], [0, 0, 1, 1], [], []>} : vector<16x64xbf16>, vector<64x32xbf16>, vector<16x32xf32> -> vector<16x32xf32>
    %207 = vector.broadcast %12 : vector<1x32xf32> to vector<16x32xf32>
    %208 = arith.addf %206, %207 : vector<16x32xf32>
    %c0_69 = arith.constant 0 : index
    %c0_70 = arith.constant 0 : index
    %209 = vector.load %arg4[%c0_69, %c0_70] : memref<16x32xf32, #tpu.memory_space<vmem>>, vector<16x32xf32>
    tpu.vector_store %arg4[%c0_69, %c0_70], %208 {strides = array<i32>} : memref<16x32xf32, #tpu.memory_space<vmem>>, vector<16x32xf32>,
    return
  }
  func.func @transform_0(%arg0: i32) -> (i32, i32) {
    %c0_i32 = arith.constant 0 : i32
    %c0_i32_0 = arith.constant 0 : i32
    return %arg0, %c0_i32 : i32, i32
  }
  func.func @transform_1(%arg0: i32) -> (i32, i32) {
    %c0_i32 = arith.constant 0 : i32
    %c0_i32_0 = arith.constant 0 : i32
    %c0_i32_1 = arith.constant 0 : i32
    return %c0_i32, %c0_i32_0 : i32, i32
  }
  func.func @transform_2(%arg0: i32) -> (i32, i32) {
    %c0_i32 = arith.constant 0 : i32
    %c0_i32_0 = arith.constant 0 : i32
    %c0_i32_1 = arith.constant 0 : i32
    return %c0_i32, %c0_i32_0 : i32, i32
  }
  func.func @transform_3(%arg0: i32) -> (i32, i32) {
    %c0_i32 = arith.constant 0 : i32
    %c0_i32_0 = arith.constant 0 : i32
    return %arg0, %c0_i32 : i32, i32
  }
}

</mosaic_0001>

<bundles_post_ra>
// kernel: tpu_custom_call.1
= control target key start
LH: loop header
LB: loop body
LE: loop exit
PB: predicated region body
PF: predicated region fallthrough
CT: control target
= control target key end

     0   :  { %8 = vsyncpa [#allocation3], 0  ;;  %s2526_s0 = inlined_call_operand.hbm [shape: f32[16,32], index: 0, kind: input, shape index: {}]   ;;  %s2527_s1 = inlined_call_operand.hbm [shape: bf16[384,128], index: 1, kind: input, shape index: {}]   ;;  %s2528_s2 = inlined_call_operand.hbm [shape: f32[24,128], index: 2, kind: input, shape index: {}]   ;;  %s2529_s3 = inlined_call_operand.hbm [shape: f32[16,32], index: 3, kind: output, shape index: {}]  }
   0x1   :  { %9 = vsyncpa [#allocation6], 0 }
   0x2   :  { %10 = vsyncpa [#allocation4], 0  ;;  %s2240_s12 = smov [#allocation5]  }
   0x3   :  { %s28_s13 = sshll.u32 %s2240_s12, 4  ;;  %s29_s13 = int_to_ptr.vmem [resolvable:$true] %s28_s13 }
   0x4   :  { %s2162_s14 = scalar_lea.vmem %s29_s13, 3072  ;;  %p2167_p1 = scmp.lt.s32.totalorder %s29_s13, %s29_s13 }
   0x5   :  { %p2163_p0 = scmp.ne.s32.totalorder %s29_s13, %s2162_s14  ;;  %p2168_p2 = scmp.lt.s32.totalorder %s2162_s14, %s2162_s14 }
   0x7   :  { %p2169_p3 = por %p2168_p2, %p2167_p1 }
   0x9   :  { %p2170_p4 = pnand %p2169_p3, %p2163_p0 }
   0xb   :  { %2173 = shalt.err (!%p2170_p4)
}
   0xc   :  { %s2241_s15 = smov 64   ;;  %s2242_s16 = smov 4  }
   0xd   :  { %34 = dma.hbm_to_vmem [thread:$0]  %s2527_s1, 3072, %s29_s13, [#allocation6], %s2241_s15, %s2241_s15, %s2242_s16  }
   0xe   :  { %s2243_s19 = smov [#allocation2]  }
   0xf   :  { %s16_s20 = sshll.u32 %s2243_s19, 4  ;;  %s17_s20 = int_to_ptr.vmem [resolvable:$true] %s16_s20 }
  0x10   :  { %s2182_s21 = scalar_lea.vmem %s17_s20, 256  ;;  %p2187_p6 = scmp.lt.s32.totalorder %s17_s20, %s17_s20 }
  0x11   :  { %p2183_p5 = scmp.ne.s32.totalorder %s17_s20, %s2182_s21  ;;  %p2188_p7 = scmp.lt.s32.totalorder %s2182_s21, %s2182_s21 }
  0x13   :  { %p2189_p8 = por %p2188_p7, %p2187_p6 }
  0x15   :  { %p2190_p9 = pnand %p2189_p8, %p2183_p5 }
  0x17   :  { %2193 = shalt.err (!%p2190_p9)
}
  0x18   :  { %s2244_s22 = smov 128   ;;  %s2245_s23 = smov 8  }
  0x19   :  { %22 = dma.hbm_to_vmem [thread:$0]  %s2526_s0, 256, %s17_s20, [#allocation3], %s2244_s22, %s2244_s22, %s2245_s23  }
  0x1a   :  { %s2246_s1 = smov [#allocation7]  }
  0x1b   :  { %s40_s26 = sshll.u32 %s2246_s1, 4  ;;  %s41_s26 = int_to_ptr.vmem [resolvable:$true] %s40_s26 }
  0x1c   :  { %s2202_s27 = scalar_lea.vmem %s41_s26, 384  ;;  %p2207_p11 = scmp.lt.s32.totalorder %s41_s26, %s41_s26 }
  0x1d   :  { %p2203_p10 = scmp.ne.s32.totalorder %s41_s26, %s2202_s27  ;;  %p2208_p12 = scmp.lt.s32.totalorder %s2202_s27, %s2202_s27 }
  0x1f   :  { %p2209_p13 = por %p2208_p12, %p2207_p11 }
  0x21   :  { %p2210_p0 = pnand %p2209_p13, %p2203_p10 }
  0x23   :  { %2213 = shalt.err (!%p2210_p0)
}
  0x24   :  { %46 = dma.hbm_to_vmem [thread:$0]  %s2528_s2, 384, %s41_s26, [#allocation6], %s2244_s22, %s2244_s22, %s2245_s23  }
  0x25   :  { %2234 = dma.done.wait [#allocation3], 256  }
  0x26   :  { %2235 = vsyncadd [#allocation3], 4294967040 }
  0x27   :  { %2236 = dma.done.wait [#allocation6], 3456  }
  0x28   :  { %2237 = vsyncadd [#allocation6], 4294963840  ;;  %v2247_v0 = vmov 0.0   ;;  %vm2248_vm0 = vmmov 0   ;;  %v2074_v1 = vld [vmem:[#allocation5 + $0x8] sm:$0xff]   ;;  %v2075_v2 = vld [vmem:[#allocation5] sm:$0xff]  }
  0x29   :  { %1879 = vmatprep.subr.bf16.mxu1 %v2247_v0  ;;  %1883 = vmatprep.mubr.msk.bf16.mxu1 %vm2248_vm0, %v2247_v0  ;;  %v100_v3 = vld [vmem:[#allocation7 + $0x10] sm:$0xff]  ;;  %v102_v5 = vld [vmem:[#allocation2 + $0x8] sm:$0xff]  ;;  %vm122_vm1 = vcmask 261120   ;;  %v1748_v15 = vld [vmem:[#allocation7 + $0x1] ss:$0 sm:$0xff]  ;;  %vm327_vm2 = vcmask 64512  }
  0x2a   :  { %1895 = vmatprep.subr.bf16.mxu0 %v2247_v0  ;;  %1897 = vmatprep.mubr.msk.bf16.mxu0 %vm2248_vm0, %v2247_v0  ;;  %v101_v4 = vld [vmem:[#allocation2] sm:$0xff]  ;;  %v2297_v7 = vadd.f32 %v102_v5, %v100_v3  ;;  %v2076_v9 = vld [vmem:[#allocation5 + $0x18] sm:$0xff]   ;;  %v1752_v17 = vld [vmem:[#allocation7 + $0xb] ss:$0 sm:$0xff]  ;;  %vm592_vm3 = vcmask 1043456   ;;  %vm1477_vm4 = vcmask 523264  }
  0x2b   :  { %1880 = vmatpush3.bf16.msra.mxu1 %v2074_v1  ;;  %v2295_v6 = vadd.f32 %v101_v4, %v100_v3  ;;  %v2077_v10 = vld [vmem:[#allocation5 + $0x10] sm:$0xff]   ;;  %v1744_v24 = vld [vmem:[#allocation7] ss:$0 sm:$0xff]  ;;  %v1758_v28 = vld [vmem:[#allocation7 + $0xc] ss:$0 sm:$0xff]  ;;  %s2249_s0 = smov 96  }
  0x2c   :  { %1881 = vmatprep.subr.bf16.mxu1 %v2247_v0  ;;  %v2078_v33 = vld [vmem:[#allocation5 + $0x28] sm:$0xff]   ;;  %v2079_v38 = vld [vmem:[#allocation5 + $0x20] sm:$0xff]   ;;  %v2080_v43 = vld [vmem:[#allocation5 + $0x38] sm:$0xff]   ;;  %s2250_s2 = smov [#allocation8]  }
  0x2d   :  { %v2301_v8 = vpack.c.bf16 %v2297_v7, %v2295_v6  ;;  %v2081_v44 = vld [vmem:[#allocation5 + $0x30] sm:$0xff]   ;;  %s1731_s30 = sshll.u32 %s2250_s2, 4  ;;  %s1732_s30 = int_to_ptr.vmem [resolvable:$true] %s1731_s30 }
  0x2e   :  { %s2214_s4 = scalar_lea.vmem %s1732_s30, 256  ;;  %p2219_p2 = scmp.lt.s32.totalorder %s1732_s30, %s1732_s30 }
  0x2f   :  { %1882 = vmatpush3.bf16.msra.mxu1 %v2075_v2  ;;  %p2215_p1 = scmp.ne.s32.totalorder %s1732_s30, %s2214_s4  ;;  %p2220_p3 = scmp.lt.s32.totalorder %s2214_s4, %s2214_s4 }
  0x30   :  { %1887 = vmatprep.subr.bf16.mxu1 %v2247_v0 }
  0x31   :  { %p2221_p4 = por %p2220_p3, %p2219_p2 }
  0x32   :  { %1884 = vmatmul.mubr.msk.bf16.vlgmr.msra.gmra.mxu1 %vm122_vm1, %v2301_v8 }
  0x33   :  { %1888 = vmatpush3.bf16.msra.mxu1 %v2076_v9  ;;  %1891 = vmatprep.mubr.msk.bf16.mxu1 %vm2248_vm0, %v2247_v0  ;;  %p2222_p5 = pnand %p2221_p4, %p2215_p1 }
  0x34   :  { %1889 = vmatprep.subr.bf16.mxu1 %v2247_v0 }
  0x37   :  { %1890 = vmatpush3.bf16.msra.mxu1 %v2077_v10 }
  0x38   :  { %1901 = vmatprep.subr.bf16.mxu1 %v2247_v0 }
  0x3a   :  { %1892 = vmatmul.mubr.msk.bf16.vlgmr.msra.gmra.mxu1 %vm122_vm1, %v2301_v8 }
  0x3b   :  { %1903 = vmatprep.mubr.msk.bf16.mxu1 %vm2248_vm0, %v2247_v0 }
  0xf2   :  { %v160_v11 = vpop.f32.mrf.mxu1 }
  0xf3   :  { %v161_v29 = vadd.f32 %v1744_v24, %v160_v11 }
  0xf4   :  { %v1885_v12 = vpop.f32.mrf.mxu1 }
  0xf5   :  { %v2324_v34 = vpack.c.bf16 %v161_v29, %v161_v29 }
  0xf6   :  { %v163_v13 = vpop.f32.mrf.mxu1 }
  0xf7   :  { %v164_v35 = vadd.f32 %v1744_v24, %v163_v13 }
  0xf8   :  { %v1886_v14 = vpop.f32.mrf.mxu1 }
  0xf9   :  { %v2332_v39 = vpack.c.bf16 %v164_v35, %v164_v35 }
  0xfa   :  { %v217_v16 = vpop.f32.mrf.mxu1 }
  0xfb   :  { %v2314_v18 = vadd.f32 %v1748_v15, %v217_v16 }
  0xfc   :  { %v1893_v19 = vpop.f32.mrf.mxu1 }
  0xfd   :  { %v231_v20 = vmul.f32 %v1752_v17, %v2314_v18  ;;  %v416_v32 = vmul.f32 %v1758_v28, %v2314_v18 }
  0xfe   :  { %v220_v21 = vpop.f32.mrf.mxu1 }
  0xff   :  { %v2317_v22 = vadd.f32 %v1748_v15, %v220_v21  ;;  %v233_v23 = vpack.c.bf16 %v231_v20, %v231_v20  ;;  %v418_v36 = vpack.c.bf16 %v416_v32, %v416_v32 }
 0x100   :  { %v1894_v25 = vpop.f32.mrf.mxu1 }
 0x101   :  { %v232_v26 = vmul.f32 %v1752_v17, %v2317_v22  ;;  %v239_v27 = vsel %vm122_vm1, %v233_v23, 0  ;;  %v417_v37 = vmul.f32 %v1758_v28, %v2317_v22  ;;  %v421_v40 = vsel %vm122_vm1, %v418_v36, 0 }
 0x102   :  { %1896 = vmatpush3.bf16.xpose.msra.mxu0 %v239_v27 }
 0x103   :  { %v234_v30 = vpack.c.bf16 %v232_v26, %v232_v26  ;;  %1907 = vmatprep.subr.bf16.mxu0 %v2247_v0  ;;  %v419_v41 = vpack.c.bf16 %v417_v37, %v417_v37 }
 0x105   :  { %v285_v31 = vsel %vm122_vm1, %v234_v30, 0  ;;  %v464_v42 = vsel %vm122_vm1, %v419_v41, 0 }
 0x106   :  { %1902 = vmatpush3.bf16.xpose.msra.mxu1 %v285_v31 }
 0x107   :  { %1915 = vmatprep.subr.bf16.mxu1 %v2247_v0 }
 0x109   :  { %1898 = vmatmul.mubr.msk.bf16.vlgmr.msra.gmra.mxu0 %vm122_vm1, %v2324_v34 }
 0x10a   :  { %1908 = vmatpush3.bf16.msra.mxu0 %v2078_v33  ;;  %1911 = vmatprep.mubr.msk.bf16.mxu0 %vm2248_vm0, %v2247_v0 }
 0x10b   :  { %1909 = vmatprep.subr.bf16.mxu0 %v2247_v0 }
 0x10d   :  { %1904 = vmatmul.mubr.msk.bf16.vlgmr.msra.gmra.mxu1 %vm122_vm1, %v2332_v39 }
 0x10e   :  { %1910 = vmatpush3.bf16.msra.mxu0 %v2079_v38  ;;  %1916 = vmatpush3.bf16.xpose.msra.mxu1 %v421_v40 }
 0x10f   :  { %1921 = vmatprep.subr.bf16.mxu0 %v2247_v0  ;;  %1917 = vmatprep.mubr.msk.bf16.mxu1 %vm2248_vm0, %v2247_v0 }
 0x110   :  { %1927 = vmatprep.subr.bf16.mxu1 %v2247_v0 }
 0x111   :  { %1912 = vmatmul.mubr.msk.bf16.vlgmr.msra.gmra.mxu0 %vm122_vm1, %v2301_v8 }
 0x112   :  { %1922 = vmatpush3.bf16.xpose.msra.mxu0 %v464_v42  ;;  %1923 = vmatprep.mubr.msk.bf16.mxu0 %vm2248_vm0, %v2247_v0 }
 0x113   :  { %1935 = vmatprep.subr.bf16.mxu0 %v2247_v0 }
 0x115   :  { %1918 = vmatmul.mubr.msk.bf16.vlgmr.msra.gmra.mxu1 %vm122_vm1, %v2324_v34 }
 0x116   :  { %1931 = vmatprep.mubr.msk.bf16.mxu1 %vm2248_vm0, %v2247_v0  ;;  %1928 = vmatpush3.bf16.msra.mxu1 %v2080_v43 }
 0x117   :  { %1929 = vmatprep.subr.bf16.mxu1 %v2247_v0 }
 0x119   :  { %1924 = vmatmul.mubr.msk.bf16.vlgmr.msra.gmra.mxu0 %vm122_vm1, %v2332_v39 }
 0x11a   :  { %1937 = vmatprep.mubr.msk.bf16.mxu0 %vm2248_vm0, %v2247_v0  ;;  %1930 = vmatpush3.bf16.msra.mxu1 %v2081_v44 }
 0x11b   :  { %1941 = vmatprep.subr.bf16.mxu1 %v2247_v0 }
 0x11d   :  { %1932 = vmatmul.mubr.msk.bf16.vlgmr.msra.gmra.mxu1 %vm122_vm1, %v2301_v8 }
 0x11e   :  { %1943 = vmatprep.mubr.msk.bf16.mxu1 %vm2248_vm0, %v2247_v0 }
 0x1c9   :  { %v275_v45 = vpop.f32.mrf.mxu0 }
 0x1ca   :  { %v328_v46 = vsel %vm327_vm2, %v275_v45, -inf }
 0x1cb   :  { %329 = vmax.xlane.f32.xlu1 %v328_v46  ;;  %v1899_v47 = vpop.f32.mrf.mxu0 }
 0x1cd   :  { %v278_v48 = vpop.f32.mrf.mxu0  ;;  %v321_v49 = vpop.f32.mrf.mxu1 }
 0x1ce   :  { %v331_v50 = vsel %vm327_vm2, %v321_v49, -inf  ;;  %v1768_v48 = vld [vmem:[#allocation7 + $0xd] ss:$0 sm:$0xff] }
 0x1cf   :  { %v1900_v51 = vpop.f32.mrf.mxu0  ;;  %332 = vmax.xlane.f32.xlu1 %v331_v50  ;;  %v1905_v52 = vpop.f32.mrf.mxu1 }
 0x1d1   :  { %v324_v53 = vpop.f32.mrf.mxu1  ;;  %v2364_v54 = vpop.f32.mrf.mxu0 }
 0x1d2   :  { %v409_v46 = vpack.c.bf16 %v2364_v54, %v2364_v54 }
 0x1d3   :  { %v1906_v55 = vpop.f32.mrf.mxu1  ;;  %v1913_v56 = vpop.f32.mrf.mxu0 }
 0x1d4   :  { %v686_v52 = vsel %vm592_vm3, %v409_v46, 0  ;;  %v779_v56 = vmul.f32 %v1768_v48, %v2314_v18 }
 0x1d5   :  { %v2366_v57 = vpop.f32.mrf.mxu0  ;;  %v457_v58 = vpop.f32.mrf.mxu1 }
 0x1d6   :  { %v506_v59 = vsel %vm327_vm2, %v457_v58, -inf  ;;  %v410_v53 = vpack.c.bf16 %v2366_v57, %v2366_v57  ;;  %v780_v57 = vmul.f32 %v1768_v48, %v2317_v22 }
 0x1d7   :  { %v1914_v60 = vpop.f32.mrf.mxu0  ;;  %507 = vmax.xlane.f32.xlu0 %v506_v59  ;;  %v1919_v61 = vpop.f32.mrf.mxu1 }
 0x1d8   :  { %v732_v60 = vsel %vm592_vm3, %v410_v53, 0  ;;  %v781_v61 = vpack.c.bf16 %v779_v56, %v779_v56 }
 0x1d9   :  { %v460_v62 = vpop.f32.mrf.mxu1  ;;  %v500_v63 = vpop.f32.mrf.mxu0 }
 0x1da   :  { %v509_v1 = vsel %vm327_vm2, %v500_v63, -inf }
 0x1db   :  { %v1925_v2 = vpop.f32.mrf.mxu0  ;;  %510 = vmax.xlane.f32.xlu0 %v509_v1  ;;  %v1920_v3 = vpop.f32.mrf.mxu1  ;;  %v784_v1 = vsel %vm122_vm1, %v781_v61, 0 }
 0x1dc   :  { %v782_v2 = vpack.c.bf16 %v780_v57, %v780_v57 }
 0x1dd   :  { %v503_v4 = vpop.f32.mrf.mxu0  ;;  %v578_v31 = vpop.f32.mrf.mxu1 }
 0x1de   :  { %v587_v32 = vpack.c.bf16 %v578_v31, %v578_v31  ;;  %v827_v4 = vsel %vm122_vm1, %v782_v2, 0 }
 0x1df   :  { %v1926_v5 = vpop.f32.mrf.mxu0  ;;  %v1933_v33 = vpop.f32.mrf.mxu1 }
 0x1e0   :  { %v594_v35 = vsel %vm592_vm3, %v587_v32, 0  ;;  %v2082_v5 = vld [vmem:[#allocation5 + $0x48] sm:$0xff]  }
 0x1e1   :  { %1936 = vmatpush3.bf16.msra.mxu0 %v594_v35  ;;  %v581_v36 = vpop.f32.mrf.mxu1 }
 0x1e2   :  { %1947 = vmatprep.subr.bf16.mxu0 %v2247_v0  ;;  %v588_v37 = vpack.c.bf16 %v581_v36, %v581_v36 }
 0x1e3   :  { %v1934_v38 = vpop.f32.mrf.mxu1 }
 0x1e4   :  { %v640_v40 = vsel %vm592_vm3, %v588_v37, 0 }
 0x1e5   :  { %1942 = vmatpush3.bf16.msra.mxu1 %v640_v40 }
 0x1e6   :  { %1953 = vmatprep.subr.bf16.mxu1 %v2247_v0 }
 0x254   :  { %v330_v9 = vpop.xlane.xlu1 %329 }
 0x255   :  { %v334_v10 = vsub.f32 %v275_v45, %v330_v9  ;;  %v2083_v9 = vld [vmem:[#allocation5 + $0x40] sm:$0xff]  }
 0x257   :  { %v336_v14 = vmul.f32 1.442695, %v334_v10 }
 0x258   :  { %v333_v11 = vpop.xlane.xlu1 %332 }
 0x259   :  { %v335_v15 = vsub.f32 %v321_v49, %v333_v11 }
 0x25b   :  { %v338_v20 = vmul.f32 1.442695, %v335_v15 }
 0x260   :  { %v508_v12 = vpop.xlane.xlu0 %507 }
 0x261   :  { %v512_v13 = vsub.f32 %v457_v58, %v508_v12 }
 0x263   :  { %v514_v16 = vmul.f32 1.442695, %v512_v13 }
 0x264   :  { %v511_v17 = vpop.xlane.xlu0 %510 }
 0x265   :  { %2098 = vpow2.f32 %v514_v16  ;;  %v513_v19 = vsub.f32 %v500_v63, %v511_v17 }
 0x266   :  { %2100 = vpow2.f32 %v336_v14 }
 0x267   :  { %v516_v21 = vmul.f32 1.442695, %v513_v19 }
 0x269   :  { %2102 = vpow2.f32 %v516_v21 }
 0x26a   :  { %2104 = vpow2.f32 %v338_v20 }
 0x272   :  { %v2099_v23 = vpop.eup %2098 }
 0x273   :  { %v518_v24 = vsel %vm327_vm2, %v2099_v23, 0.0  ;;  %v2101_v25 = vpop.eup %2100 }
 0x274   :  { %519 = vadd.xlane.f32.xlu0 %v518_v24  ;;  %v340_v27 = vsel %vm327_vm2, %v2101_v25, 0.0 }
 0x276   :  { %v2103_v26 = vpop.eup %2102 }
 0x277   :  { %v521_v28 = vsel %vm327_vm2, %v2103_v26, 0.0  ;;  %v2105_v29 = vpop.eup %2104 }
 0x278   :  { %341 = vadd.xlane.f32.xlu0 %v340_v27  ;;  %522 = vadd.xlane.f32.xlu1 %v521_v28  ;;  %v343_v30 = vsel %vm327_vm2, %v2105_v29, 0.0 }
 0x27c   :  { %344 = vadd.xlane.f32.xlu1 %v343_v30 }
 0x2fd   :  { %v520_v41 = vpop.xlane.xlu0 %519 }
 0x2fe   :  { %2106 = vrcp.f32 %v520_v41 }
 0x301   :  { %v523_v42 = vpop.xlane.xlu1 %522  ;;  %v342_v43 = vpop.xlane.xlu0 %341 }
 0x302   :  { %2108 = vrcp.f32 %v523_v42 }
 0x303   :  { %2110 = vrcp.f32 %v342_v43 }
 0x305   :  { %v345_v44 = vpop.xlane.xlu1 %344 }
 0x306   :  { %2112 = vrcp.f32 %v345_v44 }
 0x30b   :  { %v2107_v45 = vpop.eup %2106 }
 0x30c   :  { %v525_v47 = vmul.f32 %v2107_v45, %v2099_v23 }
 0x30e   :  { %v585_v49 = vpack.c.bf16 %v525_v47, %v525_v47 }
 0x30f   :  { %v2109_v50 = vpop.eup %2108 }
 0x310   :  { %v2111_v51 = vpop.eup %2110  ;;  %1938 = vmatmul.mubr.msk.bf16.vlgmr.msra.gmra.mxu0 %vm327_vm2, %v585_v49  ;;  %v527_v55 = vmul.f32 %v2109_v50, %v2103_v26 }
 0x311   :  { %1948 = vmatpush3.bf16.msra.mxu0 %v686_v52  ;;  %1949 = vmatprep.mubr.msk.bf16.mxu0 %vm2248_vm0, %v2247_v0  ;;  %v347_v58 = vmul.f32 %v2111_v51, %v2101_v25 }
 0x312   :  { %v586_v54 = vpack.c.bf16 %v527_v55, %v527_v55  ;;  %1959 = vmatprep.subr.bf16.mxu0 %v2247_v0 }
 0x313   :  { %v2113_v59 = vpop.eup %2112  ;;  %v407_v62 = vpack.c.bf16 %v347_v58, %v347_v58 }
 0x314   :  { %1944 = vmatmul.mubr.msk.bf16.vlgmr.msra.gmra.mxu1 %vm327_vm2, %v586_v54  ;;  %v349_v63 = vmul.f32 %v2113_v59, %v2105_v29 }
 0x315   :  { %1954 = vmatpush3.bf16.msra.mxu1 %v732_v60  ;;  %1955 = vmatprep.mubr.msk.bf16.mxu1 %vm2248_vm0, %v2247_v0 }
 0x316   :  { %1965 = vmatprep.subr.bf16.mxu1 %v2247_v0  ;;  %v408_v3 = vpack.c.bf16 %v349_v63, %v349_v63 }
 0x318   :  { %1950 = vmatmul.mubr.msk.bf16.vlgmr.msra.gmra.mxu0 %vm327_vm2, %v407_v62  ;;  %v1776_v62 = vld [vmem:[#allocation7 + $0xe] ss:$0 sm:$0xff] }
 0x319   :  { %1960 = vmatpush3.bf16.xpose.msra.mxu0 %v784_v1  ;;  %1961 = vmatprep.mubr.msk.bf16.mxu0 %vm2248_vm0, %v2247_v0  ;;  %v1051_v63 = vmul.f32 %v1776_v62, %v2314_v18 }
 0x31a   :  { %1971 = vmatprep.subr.bf16.mxu0 %v2247_v0 }
 0x31c   :  { %1956 = vmatmul.mubr.msk.bf16.vlgmr.msra.gmra.mxu1 %vm327_vm2, %v408_v3  ;;  %v1053_v3 = vpack.c.bf16 %v1051_v63, %v1051_v63 }
 0x31d   :  { %1966 = vmatpush3.bf16.xpose.msra.mxu1 %v827_v4  ;;  %1967 = vmatprep.mubr.msk.bf16.mxu1 %vm2248_vm0, %v2247_v0  ;;  %v1052_v4 = vmul.f32 %v1776_v62, %v2317_v22  ;;  %v2084_v22 = vld [vmem:[#allocation5 + $0x58] sm:$0xff]   ;;  %v1784_v62 = vld [vmem:[#allocation7 + $0x2] ss:$0 sm:$0xff] }
 0x31e   :  { %1979 = vmatprep.subr.bf16.mxu1 %v2247_v0 }
 0x320   :  { %1962 = vmatmul.mubr.msk.bf16.vlgmr.msra.gmra.mxu0 %vm122_vm1, %v2324_v34 }
 0x321   :  { %1975 = vmatprep.mubr.msk.bf16.mxu0 %vm2248_vm0, %v2247_v0  ;;  %1972 = vmatpush3.bf16.msra.mxu0 %v2082_v5 }
 0x322   :  { %1973 = vmatprep.subr.bf16.mxu0 %v2247_v0 }
 0x324   :  { %1968 = vmatmul.mubr.msk.bf16.vlgmr.msra.gmra.mxu1 %vm122_vm1, %v2332_v39 }
 0x325   :  { %1981 = vmatprep.mubr.msk.bf16.mxu1 %vm2248_vm0, %v2247_v0  ;;  %1974 = vmatpush3.bf16.msra.mxu0 %v2083_v9 }
 0x326   :  { %1985 = vmatprep.subr.bf16.mxu0 %v2247_v0 }
 0x328   :  { %1976 = vmatmul.mubr.msk.bf16.vlgmr.msra.gmra.mxu0 %vm122_vm1, %v2301_v8 }
 0x329   :  { %1987 = vmatprep.mubr.msk.bf16.mxu0 %vm2248_vm0, %v2247_v0 }
 0x3d0   :  { %v630_v10 = vpop.f32.mrf.mxu0 }
 0x3d2   :  { %v1939_v11 = vpop.f32.mrf.mxu0 }
 0x3d4   :  { %v633_v12 = vpop.f32.mrf.mxu0  ;;  %v676_v13 = vpop.f32.mrf.mxu1 }
 0x3d5   :  { %v1054_v12 = vpack.c.bf16 %v1052_v4, %v1052_v4 }
 0x3d6   :  { %v1940_v14 = vpop.f32.mrf.mxu0  ;;  %v1945_v15 = vpop.f32.mrf.mxu1 }
 0x3d7   :  { %v1099_v18 = vsel %vm122_vm1, %v1054_v12, 0  ;;  %v2085_v14 = vld [vmem:[#allocation5 + $0x50] sm:$0xff]  }
 0x3d8   :  { %v679_v16 = vpop.f32.mrf.mxu1  ;;  %v722_v17 = vpop.f32.mrf.mxu0 }
 0x3d9   :  { %v2418_v19 = vadd.f32 %v722_v17, %v630_v10  ;;  %v1056_v10 = vsel %vm122_vm1, %v1053_v3, 0 }
 0x3da   :  { %v1946_v20 = vpop.f32.mrf.mxu1  ;;  %v1951_v21 = vpop.f32.mrf.mxu0 }
 0x3dc   :  { %v725_v23 = vpop.f32.mrf.mxu0  ;;  %v768_v24 = vpop.f32.mrf.mxu1 }
 0x3dd   :  { %v2420_v25 = vadd.f32 %v768_v24, %v676_v13 }
 0x3de   :  { %v1952_v26 = vpop.f32.mrf.mxu0  ;;  %v1957_v27 = vpop.f32.mrf.mxu1 }
 0x3e0   :  { %v771_v28 = vpop.f32.mrf.mxu1  ;;  %v820_v29 = vpop.f32.mrf.mxu0 }
 0x3e1   :  { %v869_v30 = vsel %vm327_vm2, %v820_v29, -inf }
 0x3e2   :  { %870 = vmax.xlane.f32.xlu0 %v869_v30  ;;  %v1958_v31 = vpop.f32.mrf.mxu1  ;;  %v1963_v32 = vpop.f32.mrf.mxu0 }
 0x3e4   :  { %v823_v33 = vpop.f32.mrf.mxu0  ;;  %v863_v35 = vpop.f32.mrf.mxu1 }
 0x3e5   :  { %v872_v36 = vsel %vm327_vm2, %v863_v35, -inf }
 0x3e6   :  { %v1964_v37 = vpop.f32.mrf.mxu0  ;;  %873 = vmax.xlane.f32.xlu1 %v872_v36  ;;  %v1969_v38 = vpop.f32.mrf.mxu1 }
 0x3e8   :  { %v866_v40 = vpop.f32.mrf.mxu1  ;;  %v941_v52 = vpop.f32.mrf.mxu0 }
 0x3e9   :  { %v950_v53 = vpack.c.bf16 %v941_v52, %v941_v52 }
 0x3ea   :  { %v1970_v41 = vpop.f32.mrf.mxu1  ;;  %v1977_v55 = vpop.f32.mrf.mxu0 }
 0x3eb   :  { %v956_v56 = vsel %vm592_vm3, %v950_v53, 0 }
 0x3ec   :  { %v944_v54 = vpop.f32.mrf.mxu0  ;;  %1980 = vmatpush3.bf16.msra.mxu1 %v956_v56 }
 0x3ed   :  { %v951_v58 = vpack.c.bf16 %v944_v54, %v944_v54  ;;  %1991 = vmatprep.subr.bf16.mxu1 %v2247_v0 }
 0x3ee   :  { %v1978_v59 = vpop.f32.mrf.mxu0 }
 0x3ef   :  { %v1002_v60 = vsel %vm592_vm3, %v951_v58, 0 }
 0x3f0   :  { %1986 = vmatpush3.bf16.msra.mxu0 %v1002_v60 }
 0x3f1   :  { %1997 = vmatprep.subr.bf16.mxu0 %v2247_v0 }
 0x46b   :  { %v871_v42 = vpop.xlane.xlu0 %870 }
 0x46c   :  { %v875_v43 = vsub.f32 %v820_v29, %v871_v42 }
 0x46e   :  { %v877_v44 = vmul.f32 1.442695, %v875_v43 }
 0x46f   :  { %v874_v45 = vpop.xlane.xlu1 %873 }
 0x470   :  { %2114 = vpow2.f32 %v877_v44  ;;  %v876_v46 = vsub.f32 %v863_v35, %v874_v45 }
 0x472   :  { %v879_v47 = vmul.f32 1.442695, %v876_v46 }
 0x474   :  { %2116 = vpow2.f32 %v879_v47 }
 0x47d   :  { %v2115_v48 = vpop.eup %2114 }
 0x47e   :  { %v881_v49 = vsel %vm327_vm2, %v2115_v48, 0.0 }
 0x47f   :  { %882 = vadd.xlane.f32.xlu0 %v881_v49 }
 0x481   :  { %v2117_v50 = vpop.eup %2116 }
 0x482   :  { %v884_v51 = vsel %vm327_vm2, %v2117_v50, 0.0 }
 0x483   :  { %885 = vadd.xlane.f32.xlu1 %v884_v51 }
 0x508   :  { %v883_v61 = vpop.xlane.xlu0 %882 }
 0x509   :  { %2118 = vrcp.f32 %v883_v61 }
 0x50c   :  { %v886_v57 = vpop.xlane.xlu1 %885 }
 0x50d   :  { %2120 = vrcp.f32 %v886_v57 }
 0x516   :  { %v2119_v1 = vpop.eup %2118 }
 0x517   :  { %v888_v2 = vmul.f32 %v2119_v1, %v2115_v48 }
 0x519   :  { %v948_v5 = vpack.c.bf16 %v888_v2, %v888_v2 }
 0x51a   :  { %v2121_v9 = vpop.eup %2120 }
 0x51b   :  { %1982 = vmatmul.mubr.msk.bf16.vlgmr.msra.gmra.mxu1 %vm327_vm2, %v948_v5  ;;  %v890_v11 = vmul.f32 %v2121_v9, %v2117_v50 }
 0x51c   :  { %1992 = vmatpush3.bf16.xpose.msra.mxu1 %v1056_v10  ;;  %1993 = vmatprep.mubr.msk.bf16.mxu1 %vm2248_vm0, %v2247_v0 }
 0x51d   :  { %v949_v13 = vpack.c.bf16 %v890_v11, %v890_v11  ;;  %2003 = vmatprep.subr.bf16.mxu1 %v2247_v0 }
 0x51f   :  { %1988 = vmatmul.mubr.msk.bf16.vlgmr.msra.gmra.mxu0 %vm327_vm2, %v949_v13 }
 0x520   :  { %1998 = vmatpush3.bf16.xpose.msra.mxu0 %v1099_v18  ;;  %1999 = vmatprep.mubr.msk.bf16.mxu0 %vm2248_vm0, %v2247_v0 }
 0x521   :  { %2011 = vmatprep.subr.bf16.mxu0 %v2247_v0 }
 0x523   :  { %1994 = vmatmul.mubr.msk.bf16.vlgmr.msra.gmra.mxu1 %vm122_vm1, %v2324_v34 }
 0x524   :  { %2007 = vmatprep.mubr.msk.bf16.mxu1 %vm2248_vm0, %v2247_v0  ;;  %2004 = vmatpush3.bf16.msra.mxu1 %v2084_v22 }
 0x525   :  { %2005 = vmatprep.subr.bf16.mxu1 %v2247_v0 }
 0x527   :  { %2000 = vmatmul.mubr.msk.bf16.vlgmr.msra.gmra.mxu0 %vm122_vm1, %v2332_v39 }
 0x528   :  { %2013 = vmatprep.mubr.msk.bf16.mxu0 %vm2248_vm0, %v2247_v0  ;;  %2006 = vmatpush3.bf16.msra.mxu1 %v2085_v14 }
 0x529   :  { %2017 = vmatprep.subr.bf16.mxu1 %v2247_v0 }
 0x52b   :  { %2008 = vmatmul.mubr.msk.bf16.vlgmr.msra.gmra.mxu1 %vm122_vm1, %v2301_v8 }
 0x52c   :  { %2019 = vmatprep.mubr.msk.bf16.mxu1 %vm2248_vm0, %v2247_v0 }
 0x5db   :  { %v992_v34 = vpop.f32.mrf.mxu1 }
 0x5dc   :  { %v2457_v39 = vadd.f32 %v992_v34, %v2418_v19 }
 0x5dd   :  { %v1983_v15 = vpop.f32.mrf.mxu1 }
 0x5df   :  { %v995_v16 = vpop.f32.mrf.mxu1  ;;  %v1038_v17 = vpop.f32.mrf.mxu0 }
 0x5e0   :  { %v2460_v20 = vadd.f32 %v1038_v17, %v2420_v25 }
 0x5e1   :  { %v1984_v21 = vpop.f32.mrf.mxu1  ;;  %v1989_v23 = vpop.f32.mrf.mxu0 }
 0x5e3   :  { %v1041_v24 = vpop.f32.mrf.mxu0  ;;  %v1092_v26 = vpop.f32.mrf.mxu1 }
 0x5e4   :  { %v1141_v27 = vsel %vm327_vm2, %v1092_v26, -inf }
 0x5e5   :  { %v1990_v8 = vpop.f32.mrf.mxu0  ;;  %1142 = vmax.xlane.f32.xlu0 %v1141_v27  ;;  %v1995_v28 = vpop.f32.mrf.mxu1 }
 0x5e6   :  { %v2086_v8 = vld [vmem:[#allocation5 + $0x68] sm:$0xff]  }
 0x5e7   :  { %v1095_v29 = vpop.f32.mrf.mxu1  ;;  %v1135_v30 = vpop.f32.mrf.mxu0 }
 0x5e8   :  { %v1144_v19 = vsel %vm327_vm2, %v1135_v30, -inf }
 0x5e9   :  { %1145 = vmax.xlane.f32.xlu1 %v1144_v19  ;;  %v1996_v31 = vpop.f32.mrf.mxu1  ;;  %v2001_v32 = vpop.f32.mrf.mxu0 }
 0x5eb   :  { %v1138_v33 = vpop.f32.mrf.mxu0  ;;  %v1213_v46 = vpop.f32.mrf.mxu1 }
 0x5ec   :  { %v1222_v47 = vpack.c.bf16 %v1213_v46, %v1213_v46  ;;  %v2089_v46 = vld [vmem:[#allocation5 + $0x80] sm:$0xff]  }
 0x5ed   :  { %v2002_v35 = vpop.f32.mrf.mxu0  ;;  %v2009_v48 = vpop.f32.mrf.mxu1 }
 0x5ee   :  { %v1228_v49 = vsel %vm592_vm3, %v1222_v47, 0  ;;  %v1787_v47 = vld [vmem:[#allocation7 + $0x3] ss:$0 sm:$0xff] }
 0x5ef   :  { %v1216_v50 = vpop.f32.mrf.mxu1  ;;  %2012 = vmatpush3.bf16.msra.mxu0 %v1228_v49 }
 0x5f0   :  { %v1223_v51 = vpack.c.bf16 %v1216_v50, %v1216_v50  ;;  %2023 = vmatprep.subr.bf16.mxu0 %v2247_v0 }
 0x5f1   :  { %v2010_v52 = vpop.f32.mrf.mxu1 }
 0x5f2   :  { %v1274_v53 = vsel %vm592_vm3, %v1223_v51, 0 }
 0x5f3   :  { %2018 = vmatpush3.bf16.msra.mxu1 %v1274_v53 }
 0x5f4   :  { %2031 = vmatprep.subr.bf16.mxu1 %v2247_v0 }
 0x66e   :  { %v1143_v25 = vpop.xlane.xlu0 %1142 }
 0x66f   :  { %v1147_v36 = vsub.f32 %v1092_v26, %v1143_v25  ;;  %v1785_v25 = vld [vmem:[#allocation7 + $0x7] ss:$0 sm:$0xff] }
 0x671   :  { %v1149_v37 = vmul.f32 1.442695, %v1147_v36 }
 0x672   :  { %v1146_v38 = vpop.xlane.xlu1 %1145 }
 0x673   :  { %2122 = vpow2.f32 %v1149_v37  ;;  %v1148_v40 = vsub.f32 %v1135_v30, %v1146_v38 }
 0x675   :  { %v1151_v41 = vmul.f32 1.442695, %v1148_v40  ;;  %v1786_v40 = vld [vmem:[#allocation7 + $0x8] ss:$0 sm:$0xff] }
 0x677   :  { %2124 = vpow2.f32 %v1151_v41 }
 0x680   :  { %v2123_v42 = vpop.eup %2122 }
 0x681   :  { %v1153_v43 = vsel %vm327_vm2, %v2123_v42, 0.0 }
 0x682   :  { %1154 = vadd.xlane.f32.xlu0 %v1153_v43 }
 0x684   :  { %v2125_v44 = vpop.eup %2124 }
 0x685   :  { %v1156_v45 = vsel %vm327_vm2, %v2125_v44, 0.0 }
 0x686   :  { %1157 = vadd.xlane.f32.xlu1 %v1156_v45  ;;  %v2088_v45 = vld [vmem:[#allocation5 + $0x88] sm:$0xff]  }
 0x70b   :  { %v1155_v55 = vpop.xlane.xlu0 %1154 }
 0x70c   :  { %2126 = vrcp.f32 %v1155_v55 }
 0x70f   :  { %v1158_v56 = vpop.xlane.xlu1 %1157 }
 0x710   :  { %2128 = vrcp.f32 %v1158_v56 }
 0x719   :  { %v2127_v54 = vpop.eup %2126 }
 0x71a   :  { %v1160_v58 = vmul.f32 %v2127_v54, %v2123_v42 }
 0x71c   :  { %v1220_v59 = vpack.c.bf16 %v1160_v58, %v1160_v58 }
 0x71d   :  { %v2129_v60 = vpop.eup %2128 }
 0x71e   :  { %2014 = vmatmul.mubr.msk.bf16.vlgmr.msra.gmra.mxu0 %vm327_vm2, %v1220_v59  ;;  %v1162_v61 = vmul.f32 %v2129_v60, %v2125_v44  ;;  %v2090_v60 = vld [vmem:[#allocation5 + $0x78] sm:$0xff]  }
 0x71f   :  { %2027 = vmatprep.mubr.msk.bf16.mxu0 %vm2248_vm0, %v2247_v0  ;;  %2024 = vmatpush3.bf16.msra.mxu0 %v2086_v8 }
 0x720   :  { %v1221_v57 = vpack.c.bf16 %v1162_v61, %v1162_v61  ;;  %2025 = vmatprep.subr.bf16.mxu0 %v2247_v0 }
 0x722   :  { %2020 = vmatmul.mubr.msk.bf16.vlgmr.msra.gmra.mxu1 %vm327_vm2, %v1221_v57  ;;  %v2091_v57 = vld [vmem:[#allocation5 + $0x70] sm:$0xff]  }
 0x723   :  { %2039 = vmatprep.mubr.msk.bf16.mxu1 %vm2248_vm0, %v2247_v0  ;;  %2032 = vmatpush3.bf16.msra.mxu1 %v2088_v45 }
 0x724   :  { %2033 = vmatprep.subr.bf16.mxu1 %v2247_v0 }
 0x727   :  { %2034 = vmatpush3.bf16.msra.mxu1 %v2089_v46 }
 0x728   :  { %2035 = vmatprep.subr.bf16.mxu1 %v2247_v0 }
 0x72b   :  { %2036 = vmatpush3.bf16.msra.mxu1 %v2090_v60 }
 0x72c   :  { %2037 = vmatprep.subr.bf16.mxu1 %v2247_v0 }
 0x72f   :  { %2038 = vmatpush3.bf16.msra.mxu1 %v2091_v57  ;;  %v2094_v57 = vld [vmem:[#allocation5 + $0xb8] sm:$0xff]  }
 0x7de   :  { %v1264_v63 = vpop.f32.mrf.mxu0 }
 0x7df   :  { %v1316_v1 = vadd.f32 %v1264_v63, %v2457_v39 }
 0x7e0   :  { %v2015_v2 = vpop.f32.mrf.mxu0 }
 0x7e1   :  { %v1322_v3 = vadd.f32 %v1784_v62, %v1316_v1 }
 0x7e2   :  { %v1267_v4 = vpop.f32.mrf.mxu0  ;;  %v1310_v5 = vpop.f32.mrf.mxu1 }
 0x7e3   :  { %v1317_v9 = vadd.f32 %v1310_v5, %v2460_v20  ;;  %v1324_v10 = vadd.f32 %v1322_v3, %v2295_v6 }
 0x7e4   :  { %v2016_v11 = vpop.f32.mrf.mxu0  ;;  %v2021_v12 = vpop.f32.mrf.mxu1 }
 0x7e5   :  { %v1323_v13 = vadd.f32 %v1784_v62, %v1317_v9  ;;  %v1326_v18 = vsel %vm122_vm1, %v1324_v10, 0.0  ;;  %v1793_v9 = vld [vmem:[#allocation7 + $0x4] ss:$0 sm:$0xff] }
 0x7e6   :  { %1327 = vadd.xlane.f32.xlu0 %v1326_v18  ;;  %v1313_v22 = vpop.f32.mrf.mxu1 }
 0x7e7   :  { %v1325_v14 = vadd.f32 %v1323_v13, %v2297_v7  ;;  %v2087_v7 = vld [vmem:[#allocation5 + $0x60] sm:$0xff]  }
 0x7e8   :  { %v2022_v34 = vpop.f32.mrf.mxu1  ;;  %2026 = vmatpush3.bf16.msra.mxu0 %v2087_v7 }
 0x7e9   :  { %v1329_v39 = vsel %vm122_vm1, %v1325_v14, 0.0  ;;  %2043 = vmatprep.subr.bf16.mxu0 %v2247_v0 }
 0x7ea   :  { %1330 = vadd.xlane.f32.xlu1 %v1329_v39 }
 0x86f   :  { %v1328_v15 = vpop.xlane.xlu0 %1327 }
 0x870   :  { %v1333_v16 = vmul.f32 0.03125, %v1328_v15 }
 0x872   :  { %v1335_v17 = vsub.f32 %v1324_v10, %v1333_v16 }
 0x873   :  { %v1331_v21 = vpop.xlane.xlu1 %1330 }
 0x874   :  { %v1334_v20 = vmul.f32 0.03125, %v1331_v21  ;;  %v1337_v23 = vmul.f32 %v1335_v17, %v1335_v17 }
 0x876   :  { %v1336_v6 = vsub.f32 %v1325_v14, %v1334_v20  ;;  %v1339_v24 = vsel %vm122_vm1, %v1337_v23, 0.0 }
 0x877   :  { %1340 = vadd.xlane.f32.xlu0 %v1339_v24 }
 0x878   :  { %v1338_v26 = vmul.f32 %v1336_v6, %v1336_v6 }
 0x87a   :  { %v1342_v27 = vsel %vm122_vm1, %v1338_v26, 0.0 }
 0x87b   :  { %1343 = vadd.xlane.f32.xlu1 %v1342_v27 }
 0x900   :  { %v1341_v28 = vpop.xlane.xlu0 %1340 }
 0x901   :  { %v1345_v29 = vmul.f32 0.03125, %v1341_v28 }
 0x903   :  { %v1347_v30 = vadd.f32 1e-05, %v1345_v29 }
 0x904   :  { %v1344_v19 = vpop.xlane.xlu1 %1343 }
 0x905   :  { %2130 = vrsqrt.f32 %v1347_v30  ;;  %v1346_v31 = vmul.f32 0.03125, %v1344_v19 }
 0x907   :  { %v1348_v32 = vadd.f32 1e-05, %v1346_v31 }
 0x909   :  { %2132 = vrsqrt.f32 %v1348_v32 }
 0x912   :  { %v2131_v33 = vpop.eup %2130 }
 0x913   :  { %v1351_v35 = vmul.f32 %v2131_v33, %v1335_v17 }
 0x915   :  { %v1357_v37 = vmul.f32 %v1785_v25, %v1351_v35 }
 0x916   :  { %v2133_v36 = vpop.eup %2132 }
 0x917   :  { %v1352_v38 = vmul.f32 %v2133_v36, %v1336_v6  ;;  %v2486_v42 = vadd.f32 %v1786_v40, %v1357_v37 }
 0x919   :  { %v1358_v41 = vmul.f32 %v1785_v25, %v1352_v38 }
 0x91b   :  { %v2488_v43 = vadd.f32 %v1786_v40, %v1358_v41 }
 0x91d   :  { %v1365_v44 = vpack.c.bf16 %v2488_v43, %v2486_v42 }
 0x91f   :  { %2028 = vmatmul.mubr.msk.bf16.vlgmr.msra.gmra.mxu0 %vm122_vm1, %v1365_v44  ;;  %v2092_v44 = vld [vmem:[#allocation5 + $0x98] sm:$0xff]  }
 0x920   :  { %2047 = vmatprep.mubr.msk.bf16.mxu0 %vm2248_vm0, %v2247_v0  ;;  %2044 = vmatpush3.bf16.msra.mxu0 %v2092_v44 }
 0x921   :  { %2045 = vmatprep.subr.bf16.mxu0 %v2247_v0 }
 0x9df   :  { %v1419_v48 = vpop.f32.mrf.mxu0 }
 0x9e0   :  { %v1420_v49 = vadd.f32 %v1787_v47, %v1419_v48 }
 0x9e1   :  { %v2029_v50 = vpop.f32.mrf.mxu0 }
 0x9e2   :  { %v1791_v51 = vmul.f32 -1.442695, %v1420_v49 }
 0x9e3   :  { %v1422_v52 = vpop.f32.mrf.mxu0 }
 0x9e4   :  { %2134 = vpow2.f32 %v1791_v51  ;;  %v1423_v53 = vadd.f32 %v1787_v47, %v1422_v52 }
 0x9e5   :  { %v2030_v55 = vpop.f32.mrf.mxu0 }
 0x9e6   :  { %v1792_v56 = vmul.f32 -1.442695, %v1423_v53 }
 0x9e8   :  { %2136 = vpow2.f32 %v1792_v56 }
 0x9f1   :  { %v2135_v54 = vpop.eup %2134 }
 0x9f2   :  { %v1432_v58 = vadd.f32 1.0, %v2135_v54 }
 0x9f4   :  { %2138 = vrcp.f32 %v1432_v58  ;;  %v1802_v58 = vld [vmem:[#allocation7 + $0xa] ss:$0 sm:$0xff] }
 0x9f5   :  { %v2137_v59 = vpop.eup %2136 }
 0x9f6   :  { %v1433_v61 = vadd.f32 1.0, %v2137_v59 }
 0x9f8   :  { %2140 = vrcp.f32 %v1433_v61 }
 0xa01   :  { %v2139_v62 = vpop.eup %2138 }
 0xa02   :  { %1440 = vrot.lane.b32.xlu0 %v2139_v62, %s2241_s15 }
 0xa05   :  { %v2141_v63 = vpop.eup %2140 }
 0xa06   :  { %1442 = vrot.lane.b32.xlu1 %v2141_v63, %s2241_s15  ;;  %v2095_v63 = vld [vmem:[#allocation5 + $0xb0] sm:$0xff]  }
 0xa74   :  { %v1441_v1 = vpop.permute.xlu0 %1440 }
 0xa75   :  { %v1446_v3 = vmul.f32 %v1441_v1, %v1420_v49  ;;  %v2096_v1 = vld [vmem:[#allocation5 + $0xa8] sm:$0xff]  }
 0xa78   :  { %v1443_v2 = vpop.permute.xlu1 %1442 }
 0xa79   :  { %v1447_v4 = vmul.f32 %v1443_v2, %v1423_v53  ;;  %v1801_v53 = vld [vmem:[#allocation7 + $0x9] ss:$0 sm:$0xff]  ;;  %v2097_v2 = vld [vmem:[#allocation5 + $0xa0] sm:$0xff]  }
 0xa7b   :  { %v1448_v5 = vpack.c.bf16 %v1447_v4, %v1446_v3  ;;  %v1803_v3 = vld [vmem:[#allocation7 + $0x5] ss:$0 sm:$0xff] }
 0xa7d   :  { %2040 = vmatmul.mubr.msk.bf16.vlgmr.msra.gmra.mxu1 %vm1477_vm4, %v1448_v5 }
 0xb3d   :  { %v1515_v10 = vpop.f32.mrf.mxu1 }
 0xb3e   :  { %v1516_v11 = vadd.f32 %v1793_v9, %v1515_v10 }
 0xb3f   :  { %v2041_v12 = vpop.f32.mrf.mxu1 }
 0xb40   :  { %v1799_v13 = vmul.f32 -1.442695, %v1516_v11 }
 0xb41   :  { %v1518_v18 = vpop.f32.mrf.mxu1 }
 0xb42   :  { %2142 = vpow2.f32 %v1799_v13  ;;  %v1519_v22 = vadd.f32 %v1793_v9, %v1518_v18 }
 0xb43   :  { %v2042_v14 = vpop.f32.mrf.mxu1 }
 0xb44   :  { %v1800_v34 = vmul.f32 -1.442695, %v1519_v22  ;;  %v1807_v14 = vld [vmem:[#allocation7 + $0x6] ss:$0 sm:$0xff] }
 0xb46   :  { %2144 = vpow2.f32 %v1800_v34 }
 0xb4f   :  { %v2143_v39 = vpop.eup %2142 }
 0xb50   :  { %v1528_v15 = vadd.f32 1.0, %v2143_v39 }
 0xb52   :  { %2146 = vrcp.f32 %v1528_v15 }
 0xb53   :  { %v2145_v16 = vpop.eup %2144 }
 0xb54   :  { %v1529_v17 = vadd.f32 1.0, %v2145_v16 }
 0xb56   :  { %2148 = vrcp.f32 %v1529_v17 }
 0xb5f   :  { %v2147_v21 = vpop.eup %2146 }
 0xb60   :  { %1536 = vrot.lane.b32.xlu1 %v2147_v21, %s2249_s0 }
 0xb63   :  { %v2149_v20 = vpop.eup %2148 }
 0xb64   :  { %1538 = vrot.lane.b32.xlu1 %v2149_v20, %s2249_s0 }
 0xbd2   :  { %v1537_v23 = vpop.permute.xlu1 %1536 }
 0xbd3   :  { %v1542_v6 = vmul.f32 %v1537_v23, %v1516_v11 }
 0xbd5   :  { %v1544_v24 = vadd.f32 %v1542_v6, %v2486_v42 }
 0xbd6   :  { %v1539_v26 = vpop.permute.xlu1 %1538 }
 0xbd7   :  { %v1546_v27 = vmax.f32 %v1544_v24, 0.0  ;;  %v1543_v8 = vmul.f32 %v1539_v26, %v1519_v22 }
 0xbd9   :  { %v1545_v7 = vadd.f32 %v1543_v8, %v2488_v43  ;;  %v1548_v28 = vadd.f32 %v1546_v27, %v2486_v42 }
 0xbdb   :  { %v1547_v29 = vmax.f32 %v1545_v7, 0.0  ;;  %v1550_v30 = vsel %vm122_vm1, %v1548_v28, 0.0 }
 0xbdc   :  { %1551 = vadd.xlane.f32.xlu0 %v1550_v30 }
 0xbdd   :  { %v1549_v19 = vadd.f32 %v1547_v29, %v2488_v43  ;;  %v2093_v43 = vld [vmem:[#allocation5 + $0x90] sm:$0xff]  }
 0xbde   :  { %2046 = vmatpush3.bf16.msra.mxu0 %v2093_v43 }
 0xbdf   :  { %v1553_v31 = vsel %vm122_vm1, %v1549_v19, 0.0  ;;  %2051 = vmatprep.subr.bf16.mxu0 %v2247_v0 }
 0xbe0   :  { %1554 = vadd.xlane.f32.xlu1 %v1553_v31 }
 0xc65   :  { %v1552_v32 = vpop.xlane.xlu0 %1551 }
 0xc66   :  { %v1556_v33 = vmul.f32 0.03125, %v1552_v32 }
 0xc68   :  { %v1558_v35 = vsub.f32 %v1548_v28, %v1556_v33 }
 0xc69   :  { %v1555_v25 = vpop.xlane.xlu1 %1554 }
 0xc6a   :  { %v1557_v36 = vmul.f32 0.03125, %v1555_v25  ;;  %v1560_v37 = vmul.f32 %v1558_v35, %v1558_v35 }
 0xc6c   :  { %v1559_v38 = vsub.f32 %v1549_v19, %v1557_v36  ;;  %v1562_v40 = vsel %vm122_vm1, %v1560_v37, 0.0 }
 0xc6d   :  { %1563 = vadd.xlane.f32.xlu0 %v1562_v40 }
 0xc6e   :  { %v1561_v41 = vmul.f32 %v1559_v38, %v1559_v38 }
 0xc70   :  { %v1565_v42 = vsel %vm122_vm1, %v1561_v41, 0.0 }
 0xc71   :  { %1566 = vadd.xlane.f32.xlu0 %v1565_v42 }
 0xcf6   :  { %v1564_v45 = vpop.xlane.xlu0 %1563 }
 0xcf7   :  { %v1568_v46 = vmul.f32 0.03125, %v1564_v45 }
 0xcf9   :  { %v1570_v47 = vadd.f32 1e-05, %v1568_v46 }
 0xcfa   :  { %v1567_v48 = vpop.xlane.xlu0 %1566 }
 0xcfb   :  { %2150 = vrsqrt.f32 %v1570_v47  ;;  %v1569_v49 = vmul.f32 0.03125, %v1567_v48 }
 0xcfd   :  { %v1571_v50 = vadd.f32 1e-05, %v1569_v49 }
 0xcff   :  { %2152 = vrsqrt.f32 %v1571_v50 }
 0xd08   :  { %v2151_v51 = vpop.eup %2150 }
 0xd09   :  { %v1574_v52 = vmul.f32 %v2151_v51, %v1558_v35 }
 0xd0b   :  { %v1580_v54 = vmul.f32 %v1801_v53, %v1574_v52 }
 0xd0c   :  { %v2153_v55 = vpop.eup %2152 }
 0xd0d   :  { %v1575_v56 = vmul.f32 %v2153_v55, %v1559_v38  ;;  %v1586_v60 = vadd.f32 %v1802_v58, %v1580_v54 }
 0xd0f   :  { %v1581_v59 = vmul.f32 %v1801_v53, %v1575_v56 }
 0xd11   :  { %v1587_v61 = vadd.f32 %v1802_v58, %v1581_v59 }
 0xd13   :  { %v1588_v62 = vpack.c.bf16 %v1587_v61, %v1586_v60 }
 0xd15   :  { %2048 = vmatmul.mubr.msk.bf16.vlgmr.msra.gmra.mxu0 %vm122_vm1, %v1588_v62 }
 0xd16   :  { %2052 = vmatpush3.bf16.msra.mxu0 %v2094_v57  ;;  %2059 = vmatprep.mubr.msk.bf16.mxu0 %vm2248_vm0, %v2247_v0 }
 0xd17   :  { %2053 = vmatprep.subr.bf16.mxu0 %v2247_v0 }
 0xd1a   :  { %2054 = vmatpush3.bf16.msra.mxu0 %v2095_v63 }
 0xd1b   :  { %2055 = vmatprep.subr.bf16.mxu0 %v2247_v0 }
 0xd1e   :  { %2056 = vmatpush3.bf16.msra.mxu0 %v2096_v1 }
 0xd1f   :  { %2057 = vmatprep.subr.bf16.mxu0 %v2247_v0 }
 0xd22   :  { %2058 = vmatpush3.bf16.msra.mxu0 %v2097_v2 }
 0xdd5   :  { %v1642_v4 = vpop.f32.mrf.mxu0 }
 0xdd6   :  { %v1643_v9 = vadd.f32 %v1803_v3, %v1642_v4 }
 0xdd7   :  { %v2049_v5 = vpop.f32.mrf.mxu0 }
 0xdd8   :  { %v1649_v13 = vmax.f32 %v1643_v9, 0.0 }
 0xdd9   :  { %v1645_v10 = vpop.f32.mrf.mxu0 }
 0xdda   :  { %v1646_v11 = vadd.f32 %v1803_v3, %v1645_v10 }
 0xddb   :  { %v2050_v12 = vpop.f32.mrf.mxu0 }
 0xddc   :  { %v1650_v18 = vmax.f32 %v1646_v11, 0.0 }
 0xdde   :  { %v1651_v22 = vpack.c.bf16 %v1650_v18, %v1649_v13 }
 0xde0   :  { %2060 = vmatmul.mubr.msk.bf16.vlgmr.msra.gmra.mxu0 %vm1477_vm4, %v1651_v22 }
 0xea0   :  { %v1717_v34 = vpop.f32.mrf.mxu0 }
 0xea1   :  { %v1718_v39 = vadd.f32 %v1807_v14, %v1717_v34 }
 0xea2   :  { %v2061_v15 = vpop.f32.mrf.mxu0 }
 0xea3   :  { %1724 = vst.msk [vmem:[#allocation8] sm:$0xff] %vm122_vm1, %v1718_v39 }
 0xea4   :  { %v1720_v0 = vpop.f32.mrf.mxu0 }
 0xea5   :  { %v1721_v16 = vadd.f32 %v1807_v14, %v1720_v0 }
 0xea6   :  { %v2062_v17 = vpop.f32.mrf.mxu0 }
 0xea7   :  { %1725 = vst.msk [vmem:[#allocation8 + $0x8] sm:$0xff] %vm122_vm1, %v1721_v16 }
 0xea8   :  { %2225 = shalt.err (!%p2222_p5)
}
 0xea9   :  { %1737 = dma.vmem_to_hbm [thread:$0]  %s1732_s30, 256, %s2529_s3, [#allocation4], %s2244_s22, %s2244_s22, %s2245_s23  }
 0xeaa   :  { %2238 = dma.done.wait [#allocation4], 256  }
 0xeab   :  { %2239 = vsyncadd [#allocation4], 4294967040 }
 0xeac   :  { %1741 = vsyncpa [#allocation3], 1 }
 0xead   :  { %1742 = vsyncpa [#allocation6], 1 }
 0xeae   :  { %1743 = vsyncpa [#allocation4], 1 }

</bundles_post_ra>
